<compile_context>
chip_gen: v7x
topology: tpu7x:2x2x1
jax: 0.10.0
libtpu: 0.0.40
codegen_flags: <defaults>
</compile_context>

<pallas_src>
import functools

import jax
import jax.numpy as jnp
from jax import lax
from jax.experimental import pallas as pl
from jax.experimental.pallas import tpu as pltpu

_VMEM_LIMIT = 32 * 1024 * 1024  # safe on v5e (16 MiB default), v6e, v7x (64 MiB phys)


# ----------------------------------------------------------------------------
# Kernel 1: complex spectral mode mixing on the MXU (Karatsuba complex product)
#   out[m, b, o] = sum_i x[m, b, i] * w[m, i, o]   (complex, split re/im)
# ----------------------------------------------------------------------------
def _spectral_mix_kernel(xr_ref, xi_ref, xs_ref, wr_ref, wi_ref, ws_ref,
                         or_ref, oi_ref):
    # x*: (TM, B, Cin) bf16 ; w*: (TM, Cin, Cout) bf16 ; out: (TM, B, Cout) f32
    dn = (((2,), (1,)), ((0,), (0,)))  # contract Cin, batch over modes (MXU)
    t1 = lax.dot_general(xr_ref[...], wr_ref[...], dn,
                         preferred_element_type=jnp.float32)   # xr·wr
    t2 = lax.dot_general(xi_ref[...], wi_ref[...], dn,
                         preferred_element_type=jnp.float32)   # xi·wi
    t3 = lax.dot_general(xs_ref[...], ws_ref[...], dn,
                         preferred_element_type=jnp.float32)   # (xr+xi)·(wr+wi)
    or_ref[...] = t1 - t2              # real part
    oi_ref[...] = t3 - t1 - t2         # imag part


def spectral_mix(xr, xi, xs, wr, wi, ws, *, tile_m=128):
    M, B, Cin = xr.shape
    Cout = wr.shape[2]
    tm = min(M, tile_m)
    grid = (pl.cdiv(M, tm),)
    # Last two dims of every block stay full-array (B,Cin)/(Cin,Cout)/(B,Cout),
    # so the (8,128) divisibility rule is satisfied at any channel count.
    x_spec = pl.BlockSpec((tm, B, Cin), lambda m: (m, 0, 0))
    w_spec = pl.BlockSpec((tm, Cin, Cout), lambda m: (m, 0, 0))
    o_spec = pl.BlockSpec((tm, B, Cout), lambda m: (m, 0, 0))
    out_sd = jax.ShapeDtypeStruct((M, B, Cout), jnp.float32)
    return pl.pallas_call(
        _spectral_mix_kernel,
        grid=grid,
        in_specs=[x_spec, x_spec, x_spec, w_spec, w_spec, w_spec],
        out_specs=[o_spec, o_spec],
        out_shape=(out_sd, out_sd),
        compiler_params=pltpu.CompilerParams(
            dimension_semantics=("parallel",),      # megacore / v7x 2-TC shard
            vmem_limit_bytes=_VMEM_LIMIT),
    )(xr, xi, xs, wr, wi, ws)


# ----------------------------------------------------------------------------
# Kernel 2: 1x1 conv (channel matmul) + bias + residual add, channels-first
#   out[o, n] = spec[o, n] + sum_i W[o, i] * x[i, n] + b[o]
# Lane axis = flattened B*H*W (large, multiple of 128) -> dense, unmasked vst.
# ----------------------------------------------------------------------------
def _pointwise_add_kernel(x_ref, w_ref, b_ref, spec_ref, o_ref):
    y = jnp.dot(w_ref[...], x_ref[...], preferred_element_type=jnp.float32)
    o_ref[...] = spec_ref[...] + y + b_ref[...]


def pointwise_conv_add(x_cf, w, b, spec_cf, *, tile_n=4096):
    Cin, N = x_cf.shape
    Cout = w.shape[0]
    tn = N if N <= tile_n else tile_n       # tile_n is a multiple of 128
    grid = (pl.cdiv(N, tn),)
    return pl.pallas_call(
        _pointwise_add_kernel,
        grid=grid,
        in_specs=[pl.BlockSpec((Cin, tn), lambda i: (0, i)),
                  pl.BlockSpec((Cout, Cin), lambda i: (0, 0)),
                  pl.BlockSpec((Cout, 1), lambda i: (0, 0)),
                  pl.BlockSpec((Cout, tn), lambda i: (0, i))],
        out_specs=pl.BlockSpec((Cout, tn), lambda i: (0, i)),
        out_shape=jax.ShapeDtypeStruct((Cout, N), jnp.float32),
        input_output_aliases={3: 0},        # accumulate into spectral buffer
        compiler_params=pltpu.CompilerParams(
            dimension_semantics=("parallel",),
            vmem_limit_bytes=_VMEM_LIMIT),
    )(x_cf, w, b, spec_cf)


# ----------------------------------------------------------------------------
# One-time parameter preprocessing (hoisted out of the forward path)
# ----------------------------------------------------------------------------
def prepare_params(p):
    m1, m2 = p["modes1"], p["modes2"]
    Cin, Cout = p["w1r"].shape[0], p["w1r"].shape[1]

    def w_to_mio(w):  # (Cin, Cout, m1, m2) -> (m1*m2, Cin, Cout)
        return jnp.transpose(w, (2, 3, 0, 1)).reshape(m1 * m2, Cin, Cout)

    wr = jnp.concatenate([w_to_mio(p["w1r"]), w_to_mio(p["w2r"])], axis=0)
    wi = jnp.concatenate([w_to_mio(p["w1i"]), w_to_mio(p["w2i"])], axis=0)
    return {
        "wr": wr.astype(jnp.bfloat16),
        "wi": wi.astype(jnp.bfloat16),
        "ws": (wr + wi).astype(jnp.bfloat16),          # Karatsuba weight sum
        "conv_w": p["conv_w"].astype(jnp.bfloat16),    # (Cout, Cin)
        "conv_b": p["conv_b"].reshape(-1, 1).astype(jnp.float32),  # (Cout, 1)
    }


# ----------------------------------------------------------------------------
# FnoBlock forward (act_fn=None, as in the module's default)
# ----------------------------------------------------------------------------
@functools.partial(jax.jit, static_argnames=("m1", "m2"))
def fno_block_forward(x, prep, *, m1, m2):
    B, Cin, H, W = x.shape
    Cout = prep["conv_w"].shape[0]

    # ---- spectral branch ----
    # TODO(synk): rfft2/irfft2 have no Pallas TPU equivalent; they stay in XLA.
    x_ft = jnp.fft.rfft2(x)                          # (B, Cin, H, W//2+1) c64
    top = x_ft[:, :, :m1, :m2]
    bot = x_ft[:, :, H - m1:, :m2]

    def modes_to_mbc(z):                             # (B,Cin,m1,m2)->(m1*m2,B,Cin)
        return jnp.transpose(z, (2, 3, 0, 1)).reshape(m1 * m2, B, Cin)

    xr = jnp.concatenate([modes_to_mbc(top.real), modes_to_mbc(bot.real)], 0)
    xi = jnp.concatenate([modes_to_mbc(top.imag), modes_to_mbc(bot.imag)], 0)
    xs = xr + xi                                     # f32 add (no bf16 VALU on v5e)

    o_r, o_i = spectral_mix(xr.astype(jnp.bfloat16),
                            xi.astype(jnp.bfloat16),
                            xs.astype(jnp.bfloat16),
                            prep["wr"], prep["wi"], prep["ws"])

    def mbc_to_modes(z):                             # (m1*m2,B,Cout)->(B,Cout,m1,m2)
        return jnp.transpose(z.reshape(m1, m2, B, Cout), (2, 3, 0, 1))

    Mh = m1 * m2
    top_out = mbc_to_modes(o_r[:Mh]) + 1j * mbc_to_modes(o_i[:Mh])
    bot_out = mbc_to_modes(o_r[Mh:]) + 1j * mbc_to_modes(o_i[Mh:])

    Wf = W // 2 + 1
    out_ft = jnp.zeros((B, Cout, H, Wf), jnp.complex64)
    out_ft = out_ft.at[:, :, :m1, :m2].set(top_out.astype(jnp.complex64))
    out_ft = out_ft.at[:, :, H - m1:, :m2].set(bot_out.astype(jnp.complex64))
    x1 = jnp.fft.irfft2(out_ft, s=(H, W))            # (B, Cout, H, W) f32

    # ---- 1x1 conv + residual, channels-first (C, B*H*W): lane-dense stores ----
    N = B * H * W
    x_cf = jnp.transpose(x, (1, 0, 2, 3)).reshape(Cin, N).astype(jnp.bfloat16)
    spec_cf = jnp.transpose(x1, (1, 0, 2, 3)).reshape(Cout, N)   # f32
    out_cf = pointwise_conv_add(x_cf, prep["conv_w"], prep["conv_b"], spec_cf)
    out = jnp.transpose(out_cf.reshape(Cout, B, H, W), (1, 0, 2, 3))
    # act_fn is None by default in FnoBlock -> no activation.
    return out                                       # NCHW


# ----------------------------------------------------------------------------
# Pure-JAX reference (mirrors the PyTorch module semantics) for a sanity check
# ----------------------------------------------------------------------------
def reference_forward(x, p):
    B, Cin, H, W = x.shape
    m1, m2 = p["modes1"], p["modes2"]
    Cout = p["w1r"].shape[1]
    w1 = p["w1r"] + 1j * p["w1i"]
    w2 = p["w2r"] + 1j * p["w2i"]
    x_ft = jnp.fft.rfft2(x)
    out_ft = jnp.zeros((B, Cout, H, W // 2 + 1), jnp.complex64)
    out_ft = out_ft.at[:, :, :m1, :m2].set(
        jnp.einsum('bixy,ioxy->boxy', x_ft[:, :, :m1, :m2], w1))
    out_ft = out_ft.at[:, :, H - m1:, :m2].set(
        jnp.einsum('bixy,ioxy->boxy', x_ft[:, :, H - m1:, :m2], w2))
    x1 = jnp.fft.irfft2(out_ft, s=(H, W))
    x2 = jnp.einsum('bihw,oi->bohw', x, p["conv_w"]) \
        + p["conv_b"][None, :, None, None]
    return x1 + x2


def init_params(key, in_chan, out_chan, modes1, modes2):
    k1, k2, k3, k4, k5, k6 = jax.random.split(key, 6)
    scale = 1.0 / (in_chan * out_chan)
    shp = (in_chan, out_chan, modes1, modes2)
    return {
        "modes1": modes1,
        "modes2": modes2,
        "w1r": scale * jax.random.uniform(k1, shp, jnp.float32),
        "w1i": scale * jax.random.uniform(k2, shp, jnp.float32),
        "w2r": scale * jax.random.uniform(k3, shp, jnp.float32),
        "w2i": scale * jax.random.uniform(k4, shp, jnp.float32),
        # nn.Conv2d(in, out, 1): weight (out, in, 1, 1) -> stored as (out, in).
        "conv_w": 0.5 * jax.random.normal(k5, (out_chan, in_chan), jnp.float32),
        "conv_b": 0.1 * jax.random.normal(k6, (out_chan,), jnp.float32),
    }


if __name__ == "__main__":
    B, Cin, Cout, H, W = 2, 4, 4, 16, 16
    modes1, modes2 = 4, 4

    key = jax.random.PRNGKey(0)
    kx, kp = jax.random.split(key)
    x = jax.random.normal(kx, (B, Cin, H, W), jnp.float32)
    params = init_params(kp, Cin, Cout, modes1, modes2)
    prep = prepare_params(params)            # hoisted weight preprocessing

    out = fno_block_forward(x, prep, m1=modes1, m2=modes2)
    out = jax.block_until_ready(out)

    ref = jax.block_until_ready(reference_forward(x, params))
    assert out.shape == (B, Cout, H, W)
    # bf16 MXU operands (f32 accumulation) -> looser tolerance than pure f32.
    assert jnp.allclose(out, ref, rtol=5e-2, atol=5e-2), "mismatch vs reference"

    print("KERNEL_OK")
</pallas_src>

<mosaic_0001>
module attributes {stable_mosaic.version = 11 : i64} {
  func.func @_spectral_mix_kernel(%arg0: i32, %arg1: memref<32x2x4xbf16, #tpu.memory_space<vmem>>, %arg2: memref<32x2x4xbf16, #tpu.memory_space<vmem>>, %arg3: memref<32x2x4xbf16, #tpu.memory_space<vmem>>, %arg4: memref<32x4x4xbf16, #tpu.memory_space<vmem>>, %arg5: memref<32x4x4xbf16, #tpu.memory_space<vmem>>, %arg6: memref<32x4x4xbf16, #tpu.memory_space<vmem>>, %arg7: memref<32x2x4xf32, #tpu.memory_space<vmem>>, %arg8: memref<32x2x4xf32, #tpu.memory_space<vmem>>) attributes {dimension_semantics = [#tpu.dimension_semantics<parallel>], iteration_bounds = array<i64: 1>, scalar_prefetch = 0 : i64, scratch_operands = 0 : i64, tpu.core_type = #tpu.core_type<tc>, window_params = [{transform_indices = @transform_0, window_bounds = array<i64: 32, 2, 4>}, {transform_indices = @transform_1, window_bounds = array<i64: 32, 2, 4>}, {transform_indices = @transform_2, window_bounds = array<i64: 32, 2, 4>}, {transform_indices = @transform_3, window_bounds = array<i64: 32, 4, 4>}, {transform_indices = @transform_4, window_bounds = array<i64: 32, 4, 4>}, {transform_indices = @transform_5, window_bounds = array<i64: 32, 4, 4>}, {transform_indices = @transform_6, window_bounds = array<i64: 32, 2, 4>}, {transform_indices = @transform_7, window_bounds = array<i64: 32, 2, 4>}]} {
    %c0 = arith.constant 0 : index
    %c0_0 = arith.constant 0 : index
    %c0_1 = arith.constant 0 : index
    %0 = vector.load %arg1[%c0, %c0_0, %c0_1] : memref<32x2x4xbf16, #tpu.memory_space<vmem>>, vector<32x2x4xbf16>
    %c0_2 = arith.constant 0 : index
    %c0_3 = arith.constant 0 : index
    %c0_4 = arith.constant 0 : index
    %1 = vector.load %arg4[%c0_2, %c0_3, %c0_4] : memref<32x4x4xbf16, #tpu.memory_space<vmem>>, vector<32x4x4xbf16>
    %cst = arith.constant dense<0.000000e+00> : vector<32x2x4xf32>
    %2 = tpu.matmul %0, %1, %cst {dimension_numbers = #tpu.dot_dimension_numbers<[2], [1], [1], [2], [0, 0, 0, 1, 1, 2], [0], [0]>} : vector<32x2x4xbf16>, vector<32x4x4xbf16>, vector<32x2x4xf32> -> vector<32x2x4xf32>
    %c0_5 = arith.constant 0 : index
    %c0_6 = arith.constant 0 : index
    %c0_7 = arith.constant 0 : index
    %3 = vector.load %arg2[%c0_5, %c0_6, %c0_7] : memref<32x2x4xbf16, #tpu.memory_space<vmem>>, vector<32x2x4xbf16>
    %c0_8 = arith.constant 0 : index
    %c0_9 = arith.constant 0 : index
    %c0_10 = arith.constant 0 : index
    %4 = vector.load %arg5[%c0_8, %c0_9, %c0_10] : memref<32x4x4xbf16, #tpu.memory_space<vmem>>, vector<32x4x4xbf16>
    %cst_11 = arith.constant dense<0.000000e+00> : vector<32x2x4xf32>
    %5 = tpu.matmul %3, %4, %cst_11 {dimension_numbers = #tpu.dot_dimension_numbers<[2], [1], [1], [2], [0, 0, 0, 1, 1, 2], [0], [0]>} : vector<32x2x4xbf16>, vector<32x4x4xbf16>, vector<32x2x4xf32> -> vector<32x2x4xf32>
    %c0_12 = arith.constant 0 : index
    %c0_13 = arith.constant 0 : index
    %c0_14 = arith.constant 0 : index
    %6 = vector.load %arg3[%c0_12, %c0_13, %c0_14] : memref<32x2x4xbf16, #tpu.memory_space<vmem>>, vector<32x2x4xbf16>
    %c0_15 = arith.constant 0 : index
    %c0_16 = arith.constant 0 : index
    %c0_17 = arith.constant 0 : index
    %7 = vector.load %arg6[%c0_15, %c0_16, %c0_17] : memref<32x4x4xbf16, #tpu.memory_space<vmem>>, vector<32x4x4xbf16>
    %cst_18 = arith.constant dense<0.000000e+00> : vector<32x2x4xf32>
    %8 = tpu.matmul %6, %7, %cst_18 {dimension_numbers = #tpu.dot_dimension_numbers<[2], [1], [1], [2], [0, 0, 0, 1, 1, 2], [0], [0]>} : vector<32x2x4xbf16>, vector<32x4x4xbf16>, vector<32x2x4xf32> -> vector<32x2x4xf32>
    %9 = arith.subf %2, %5 : vector<32x2x4xf32>
    %c0_19 = arith.constant 0 : index
    %c0_20 = arith.constant 0 : index
    %c0_21 = arith.constant 0 : index
    %10 = vector.load %arg7[%c0_19, %c0_20, %c0_21] : memref<32x2x4xf32, #tpu.memory_space<vmem>>, vector<32x2x4xf32>
    tpu.vector_store %arg7[%c0_19, %c0_20, %c0_21], %9 {strides = array<i32>} : memref<32x2x4xf32, #tpu.memory_space<vmem>>, vector<32x2x4xf32>,
    %11 = arith.subf %8, %2 : vector<32x2x4xf32>
    %12 = arith.subf %11, %5 : vector<32x2x4xf32>
    %c0_22 = arith.constant 0 : index
    %c0_23 = arith.constant 0 : index
    %c0_24 = arith.constant 0 : index
    %13 = vector.load %arg8[%c0_22, %c0_23, %c0_24] : memref<32x2x4xf32, #tpu.memory_space<vmem>>, vector<32x2x4xf32>
    tpu.vector_store %arg8[%c0_22, %c0_23, %c0_24], %12 {strides = array<i32>} : memref<32x2x4xf32, #tpu.memory_space<vmem>>, vector<32x2x4xf32>,
    return
  }
  func.func @transform_0(%arg0: i32) -> (i32, i32, i32) {
    %c0_i32 = arith.constant 0 : i32
    %c0_i32_0 = arith.constant 0 : i32
    %c0_i32_1 = arith.constant 0 : i32
    return %arg0, %c0_i32, %c0_i32_0 : i32, i32, i32
  }
  func.func @transform_1(%arg0: i32) -> (i32, i32, i32) {
    %c0_i32 = arith.constant 0 : i32
    %c0_i32_0 = arith.constant 0 : i32
    %c0_i32_1 = arith.constant 0 : i32
    return %arg0, %c0_i32, %c0_i32_0 : i32, i32, i32
  }
  func.func @transform_2(%arg0: i32) -> (i32, i32, i32) {
    %c0_i32 = arith.constant 0 : i32
    %c0_i32_0 = arith.constant 0 : i32
    %c0_i32_1 = arith.constant 0 : i32
    return %arg0, %c0_i32, %c0_i32_0 : i32, i32, i32
  }
  func.func @transform_3(%arg0: i32) -> (i32, i32, i32) {
    %c0_i32 = arith.constant 0 : i32
    %c0_i32_0 = arith.constant 0 : i32
    %c0_i32_1 = arith.constant 0 : i32
    return %arg0, %c0_i32, %c0_i32_0 : i32, i32, i32
  }
  func.func @transform_4(%arg0: i32) -> (i32, i32, i32) {
    %c0_i32 = arith.constant 0 : i32
    %c0_i32_0 = arith.constant 0 : i32
    %c0_i32_1 = arith.constant 0 : i32
    return %arg0, %c0_i32, %c0_i32_0 : i32, i32, i32
  }
  func.func @transform_5(%arg0: i32) -> (i32, i32, i32) {
    %c0_i32 = arith.constant 0 : i32
    %c0_i32_0 = arith.constant 0 : i32
    %c0_i32_1 = arith.constant 0 : i32
    return %arg0, %c0_i32, %c0_i32_0 : i32, i32, i32
  }
  func.func @transform_6(%arg0: i32) -> (i32, i32, i32) {
    %c0_i32 = arith.constant 0 : i32
    %c0_i32_0 = arith.constant 0 : i32
    %c0_i32_1 = arith.constant 0 : i32
    return %arg0, %c0_i32, %c0_i32_0 : i32, i32, i32
  }
  func.func @transform_7(%arg0: i32) -> (i32, i32, i32) {
    %c0_i32 = arith.constant 0 : i32
    %c0_i32_0 = arith.constant 0 : i32
    %c0_i32_1 = arith.constant 0 : i32
    return %arg0, %c0_i32, %c0_i32_0 : i32, i32, i32
  }
}

module attributes {stable_mosaic.version = 11 : i64} {
  func.func @_pointwise_add_kernel(%arg0: i32, %arg1: memref<4x512xbf16, #tpu.memory_space<vmem>>, %arg2: memref<4x4xbf16, #tpu.memory_space<vmem>>, %arg3: memref<4x1xf32, #tpu.memory_space<vmem>>, %arg4: memref<4x512xf32, #tpu.memory_space<vmem>>, %arg5: memref<4x512xf32, #tpu.memory_space<vmem>>) attributes {dimension_semantics = [#tpu.dimension_semantics<parallel>], iteration_bounds = array<i64: 1>, scalar_prefetch = 0 : i64, scratch_operands = 0 : i64, tpu.core_type = #tpu.core_type<tc>, window_params = [{transform_indices = @transform_0, window_bounds = array<i64: 4, 512>}, {pipeline_mode = #tpu.pipeline_mode<synchronous>, transform_indices = @transform_1, window_bounds = array<i64: 4, 4>}, {pipeline_mode = #tpu.pipeline_mode<synchronous>, transform_indices = @transform_2, window_bounds = array<i64: 4, 1>}, {transform_indices = @transform_3, window_bounds = array<i64: 4, 512>}, {transform_indices = @transform_4, window_bounds = array<i64: 4, 512>}]} {
    %c0 = arith.constant 0 : index
    %c0_0 = arith.constant 0 : index
    %0 = vector.load %arg2[%c0, %c0_0] : memref<4x4xbf16, #tpu.memory_space<vmem>>, vector<4x4xbf16>
    %c0_1 = arith.constant 0 : index
    %c0_2 = arith.constant 0 : index
    %1 = vector.load %arg1[%c0_1, %c0_2] : memref<4x512xbf16, #tpu.memory_space<vmem>>, vector<4x512xbf16>
    %cst = arith.constant dense<0.000000e+00> : vector<4x512xf32>
    %2 = tpu.matmul %0, %1, %cst {dimension_numbers = #tpu.dot_dimension_numbers<[1], [0], [0], [1], [0, 0, 1, 1], [], []>} : vector<4x4xbf16>, vector<4x512xbf16>, vector<4x512xf32> -> vector<4x512xf32>
    %c0_3 = arith.constant 0 : index
    %c0_4 = arith.constant 0 : index
    %3 = vector.load %arg4[%c0_3, %c0_4] : memref<4x512xf32, #tpu.memory_space<vmem>>, vector<4x512xf32>
    %4 = arith.addf %3, %2 : vector<4x512xf32>
    %c0_5 = arith.constant 0 : index
    %c0_6 = arith.constant 0 : index
    %5 = vector.load %arg3[%c0_5, %c0_6] : memref<4x1xf32, #tpu.memory_space<vmem>>, vector<4x1xf32>
    %6 = vector.broadcast %5 : vector<4x1xf32> to vector<4x512xf32>
    %7 = arith.addf %4, %6 : vector<4x512xf32>
    %c0_7 = arith.constant 0 : index
    %c0_8 = arith.constant 0 : index
    %8 = vector.load %arg5[%c0_7, %c0_8] : memref<4x512xf32, #tpu.memory_space<vmem>>, vector<4x512xf32>
    tpu.vector_store %arg5[%c0_7, %c0_8], %7 {strides = array<i32>} : memref<4x512xf32, #tpu.memory_space<vmem>>, vector<4x512xf32>,
    return
  }
  func.func @transform_0(%arg0: i32) -> (i32, i32) {
    %c0_i32 = arith.constant 0 : i32
    %c0_i32_0 = arith.constant 0 : i32
    return %c0_i32, %arg0 : i32, i32
  }
  func.func @transform_1(%arg0: i32) -> (i32, i32) {
    %c0_i32 = arith.constant 0 : i32
    %c0_i32_0 = arith.constant 0 : i32
    %c0_i32_1 = arith.constant 0 : i32
    return %c0_i32, %c0_i32_0 : i32, i32
  }
  func.func @transform_2(%arg0: i32) -> (i32, i32) {
    %c0_i32 = arith.constant 0 : i32
    %c0_i32_0 = arith.constant 0 : i32
    %c0_i32_1 = arith.constant 0 : i32
    return %c0_i32, %c0_i32_0 : i32, i32
  }
  func.func @transform_3(%arg0: i32) -> (i32, i32) {
    %c0_i32 = arith.constant 0 : i32
    %c0_i32_0 = arith.constant 0 : i32
    return %c0_i32, %arg0 : i32, i32
  }
  func.func @transform_4(%arg0: i32) -> (i32, i32) {
    %c0_i32 = arith.constant 0 : i32
    %c0_i32_0 = arith.constant 0 : i32
    return %c0_i32, %arg0 : i32, i32
  }
}

</mosaic_0001>

<bundles_post_ra>
// kernel: reverse.0
= control target key start
LH: loop header
LB: loop body
LE: loop exit
PB: predicated region body
PF: predicated region fallthrough
CT: control target
= control target key end

     0   :  { %v71_v3 = vlaneseq  ;;  %v64_v9 = vld [vmem:[#allocation0 + $0x7] ss:$-1 sm:$0xff]  ;;  %v78_v12 = vld [vmem:[#allocation0 + $0x17] ss:$-1 sm:$0xff]  ;;  %s329_s0 = inlined_call_operand.vmem [shape: f32[2,4,16,7], index: 0, kind: input, shape index: {}]   ;;  %s330_s1 = inlined_call_operand.vmem [shape: f32[2,4,16,7], index: 1, kind: output, shape index: {}]  }
   0x1   :  { %v44_v0 = vld [vmem:[%s329_s0] sm:$0xff]  ;;  %v46_v1 = vld [vmem:[%s329_s0 + $0x8] sm:$0xff]  ;;  %v48_v2 = vld [vmem:[%s329_s0 + $0x10] sm:$0xff]  ;;  %v65_v10 = vrot.slane %v64_v9, 1  ;;  %v79_v14 = vrot.slane %v78_v12, 1 }
   0x2   :  { %45 = vst [vmem:[#allocation0 + $0x8] sm:$0xff] %v44_v0  ;;  %47 = vst [vmem:[#allocation0 + $0x18] sm:$0xff] %v46_v1  ;;  %v50_v4 = vld [vmem:[%s329_s0 + $0x18] sm:$0xff]  ;;  %v52_v5 = vld [vmem:[%s329_s0 + $0x20] sm:$0xff]  ;;  %v72_v11 = vshrl.u32 %v71_v3, 7 }
   0x3   :  { %49 = vst [vmem:[#allocation0 + $0x28] sm:$0xff] %v48_v2  ;;  %v54_v6 = vld [vmem:[%s329_s0 + $0x28] sm:$0xff]  ;;  %51 = vst [vmem:[#allocation0 + $0x38] sm:$0xff] %v50_v4  ;;  %v56_v7 = vld [vmem:[%s329_s0 + $0x30] sm:$0xff] }
   0x4   :  { %53 = vst [vmem:[#allocation0 + $0x48] sm:$0xff] %v52_v5  ;;  %55 = vst [vmem:[#allocation0 + $0x58] sm:$0xff] %v54_v6  ;;  %v58_v8 = vld [vmem:[%s329_s0 + $0x38] sm:$0xff]  ;;  %v92_v13 = vld [vmem:[#allocation0 + $0x27] ss:$-1 sm:$0xff]  ;;  %vm73_vm0 = vcmp.lt.s32.totalorder %v72_v11, 7 }
   0x5   :  { %57 = vst [vmem:[#allocation0 + $0x68] sm:$0xff] %v56_v7  ;;  %59 = vst [vmem:[#allocation0 + $0x78] sm:$0xff] %v58_v8  ;;  %v93_v15 = vrot.slane %v92_v13, 1  ;;  %v106_v16 = vld [vmem:[#allocation0 + $0x37] ss:$-1 sm:$0xff] }
   0x6   :  { %66 = vst [vmem:[#allocation1] sm:$0xff] %v65_v10  ;;  %v107_v17 = vrot.slane %v106_v16, 1  ;;  %v120_v18 = vld [vmem:[#allocation0 + $0x47] ss:$-1 sm:$0xff]  ;;  %v134_v19 = vld [vmem:[#allocation0 + $0x57] ss:$-1 sm:$0xff] }
   0x7   :  { %80 = vst [vmem:[#allocation1 + $0x8] sm:$0xff] %v79_v14  ;;  %94 = vst [vmem:[#allocation1 + $0x10] sm:$0xff] %v93_v15  ;;  %v121_v20 = vrot.slane %v120_v18, 1  ;;  %v135_v21 = vrot.slane %v134_v19, 1  ;;  %v148_v22 = vld [vmem:[#allocation0 + $0x67] ss:$-1 sm:$0xff] }
   0x8   :  { %v162_v23 = vld [vmem:[#allocation0 + $0x77] ss:$-1 sm:$0xff]  ;;  %108 = vst [vmem:[#allocation1 + $0x18] sm:$0xff] %v107_v17  ;;  %v149_v24 = vrot.slane %v148_v22, 1 }
   0x9   :  { %v163_v25 = vrot.slane %v162_v23, 1  ;;  %v69_v26 = vld [vmem:[#allocation0 + $0xf] ss:$-1 sm:$0xff]  ;;  %v83_v27 = vld [vmem:[#allocation0 + $0x1f] ss:$-1 sm:$0xff]  ;;  %122 = vst [vmem:[#allocation1 + $0x20] sm:$0xff] %v121_v20 }
   0xa   :  { %v97_v28 = vld [vmem:[#allocation0 + $0x2f] ss:$-1 sm:$0xff]  ;;  %136 = vst [vmem:[#allocation1 + $0x28] sm:$0xff] %v135_v21  ;;  %v70_v29 = vrot.slane %v69_v26, 1  ;;  %v84_v30 = vrot.slane %v83_v27, 1  ;;  %150 = vst [vmem:[#allocation1 + $0x30] sm:$0xff] %v149_v24 }
   0xb   :  { %v98_v31 = vrot.slane %v97_v28, 1  ;;  %v111_v32 = vld [vmem:[#allocation0 + $0x3f] ss:$-1 sm:$0xff]  ;;  %164 = vst [vmem:[#allocation1 + $0x38] sm:$0xff] %v163_v25  ;;  %v125_v34 = vld [vmem:[#allocation0 + $0x4f] ss:$-1 sm:$0xff] }
   0xc   :  { %v112_v33 = vrot.slane %v111_v32, 1  ;;  %v139_v35 = vld [vmem:[#allocation0 + $0x5f] ss:$-1 sm:$0xff]  ;;  %74 = vst.msk [vmem:[#allocation1] sm:$0xff] %vm73_vm0, %v70_v29  ;;  %88 = vst.msk [vmem:[#allocation1 + $0x8] sm:$0xff] %vm73_vm0, %v84_v30  ;;  %v126_v36 = vrot.slane %v125_v34, 1 }
   0xd   :  { %102 = vst.msk [vmem:[#allocation1 + $0x10] sm:$0xff] %vm73_vm0, %v98_v31  ;;  %v140_v37 = vrot.slane %v139_v35, 1  ;;  %v153_v38 = vld [vmem:[#allocation0 + $0x6f] ss:$-1 sm:$0xff]  ;;  %v167_v39 = vld [vmem:[#allocation0 + $0x7f] ss:$-1 sm:$0xff] }
   0xe   :  { %116 = vst.msk [vmem:[#allocation1 + $0x18] sm:$0xff] %vm73_vm0, %v112_v33  ;;  %v154_v40 = vrot.slane %v153_v38, 1  ;;  %v168_v41 = vrot.slane %v167_v39, 1  ;;  %130 = vst.msk [vmem:[#allocation1 + $0x20] sm:$0xff] %vm73_vm0, %v126_v36 }
   0xf   :  { %144 = vst.msk [vmem:[#allocation1 + $0x28] sm:$0xff] %vm73_vm0, %v140_v37 }
  0x10   :  { %158 = vst.msk [vmem:[#allocation1 + $0x30] sm:$0xff] %vm73_vm0, %v154_v40  ;;  %172 = vst.msk [vmem:[#allocation1 + $0x38] sm:$0xff] %vm73_vm0, %v168_v41 }
  0x13   :  { %v214_v42 = vld [vmem:[#allocation1] sm:$0xff]  ;;  %v216_v43 = vld [vmem:[#allocation1 + $0x8] sm:$0xff] }
  0x14   :  { %v218_v44 = vld [vmem:[#allocation1 + $0x10] sm:$0xff]  ;;  %215 = vst [vmem:[%s330_s1] sm:$0xff] %v214_v42  ;;  %217 = vst [vmem:[%s330_s1 + $0x8] sm:$0xff] %v216_v43 }
  0x15   :  { %219 = vst [vmem:[%s330_s1 + $0x10] sm:$0xff] %v218_v44  ;;  %v220_v45 = vld [vmem:[#allocation1 + $0x18] sm:$0xff]  ;;  %v222_v46 = vld [vmem:[#allocation1 + $0x20] sm:$0xff] }
  0x16   :  { %221 = vst [vmem:[%s330_s1 + $0x18] sm:$0xff] %v220_v45  ;;  %v224_v47 = vld [vmem:[#allocation1 + $0x28] sm:$0xff]  ;;  %223 = vst [vmem:[%s330_s1 + $0x20] sm:$0xff] %v222_v46 }
  0x17   :  { %225 = vst [vmem:[%s330_s1 + $0x28] sm:$0xff] %v224_v47  ;;  %v226_v48 = vld [vmem:[#allocation1 + $0x30] sm:$0xff]  ;;  %v228_v49 = vld [vmem:[#allocation1 + $0x38] sm:$0xff] }
  0x18   :  { %227 = vst [vmem:[%s330_s1 + $0x30] sm:$0xff] %v226_v48  ;;  %229 = vst [vmem:[%s330_s1 + $0x38] sm:$0xff] %v228_v49 }

// kernel: fno_block_forward.3
= control target key start
LH: loop header
LB: loop body
LE: loop exit
PB: predicated region body
PF: predicated region fallthrough
CT: control target
= control target key end

     0   :  { %v25_v0 = vlaneseq  ;;  %v179_v2 = vmov 1983009808   ;;  %v180_v4 = vmov 0   ;;  %vm42_vm0 = vcmask 1041408   ;;  %s228_s0 = inlined_call_operand.vmem [shape: bf16[4,512], index: 0, kind: input, shape index: {}]   ;;  %s229_s2 = inlined_call_operand.vmem [shape: f32[4,1], index: 2, kind: input, shape index: {}]   ;;  %s230_s1 = inlined_call_operand.vmem [shape: bf16[4,4], index: 1, kind: input, shape index: {}]   ;;  %s231_s3 = inlined_call_operand.vmem [shape: f32[4,512], index: 3, kind: input, shape index: {}, may-alias: {3,4}]   ;;  %s232_s4 = inlined_call_operand.vmem [shape: f32[4,512], index: 4, kind: output, shape index: {}, may-alias: {3,4}]  }
   0x1   :  { %v19_v1 = vld [vmem:[%s228_s0] sm:$0xff]  ;;  %v23_v3 = vunpack.c.l.s4 %v179_v2  ;;  %87 = vmatprep.mubr.bf16.mxu0 %v180_v4  ;;  %128 = vmatprep.mubr.bf16.mxu1 %v180_v4  ;;  %vm38_vm1 = vcmask 31744   ;;  %v181_v17 = vmov 839922192   ;;  %v138_v27 = vld [vmem:[%s231_s3 + $0x8] sm:$0xff] }
   0x2   :  { %v149_v5 = vld [vmem:[%s229_s2] sm:$0xf]  ;;  %v26_v6 = vshrl.u32 %v25_v0, 7  ;;  %177 = vset.pattern.permute.xlu0 %v180_v4  ;;  %v21_v8 = vcombine.high %v19_v1, %v19_v1  ;;  %v155_v18 = vunpack.c.l.s4 %v181_v17 }
   0x3   :  { %v24_v7 = vunpack.c.0.s8 %v23_v3  ;;  %152 = vperm.xlu0 %177, %v149_v5   ;;  %v18_v16 = vld [vmem:[%s230_s1] sm:$0x3] }
   0x4   :  { %v156_v19 = vunpack.c.0.s8 %v155_v18  ;;  %v137_v25 = vld [vmem:[%s231_s3] sm:$0xff] }
   0x5   :  { %v27_v9 = vsub.s32 %v24_v7, %v26_v6 }
   0x6   :  { %v159_v20 = vsub.s32 %v156_v19, %v26_v6 }
   0x7   :  { %v28_v10 = vrot.slane %v19_v1, %v27_v9  ;;  %v35_v11 = vrot.slane %v21_v8, %v27_v9 }
   0x9   :  { %v36_v12 = vcombine.high %v28_v10, %v28_v10  ;;  %v37_v13 = vcombine.high %v35_v11, %v35_v11  ;;  %v44_v14 = vsel %vm42_vm0, %v28_v10, 0  ;;  %v50_v15 = vsel %vm42_vm0, %v35_v11, 0 }
   0xb   :  { %170 = vmatprep.subr.msk.bf16.mxu0 %vm42_vm0, %v36_v12  ;;  %172 = vmatprep.subr.msk.bf16.mxu1 %vm42_vm0, %v37_v13 }
   0xc   :  { %56 = vmatpush1.bf16.msra.mxu0 %v44_v14  ;;  %97 = vmatpush1.bf16.msra.mxu1 %v50_v15 }
   0xf   :  { %171 = vmatmul.mubr.msk.bf16.vlgmr.msra.gmra.mrb[0].mxu0 %vm38_vm1, %v18_v16  ;;  %173 = vmatmul.mubr.msk.bf16.vlgmr.msra.gmra.mrb[0].mxu1 %vm38_vm1, %v18_v16 }
  0x82   :  { %v153_v21 = vpop.permute.xlu0 %152 }
  0x83   :  { %v160_v32 = vrot.slane %v153_v21, %v159_v20 }
  0xe2   :  { %v89_v22 = vpop.f32.mrb[0].mxu0  ;;  %v130_v23 = vpop.f32.mrb[0].mxu1 }
  0xe3   :  { %v91_v24 = vpop.f32.mrb[1].mxu0  ;;  %v132_v26 = vpop.f32.mrb[1].mxu1 }
  0xe4   :  { %v143_v28 = vcombine.low %v89_v22, %v91_v24  ;;  %v144_v29 = vcombine.low %v130_v23, %v132_v26  ;;  %v93_v30 = vpop.f32.mrb[2].mxu0  ;;  %v134_v31 = vpop.f32.mrb[2].mxu1 }
  0xe5   :  { %v94_v33 = vpop.f32.mrb[3].mxu0  ;;  %v135_v34 = vpop.f32.mrb[3].mxu1 }
  0xe6   :  { %v147_v35 = vadd.f32 %v143_v28, %v137_v25  ;;  %v148_v36 = vadd.f32 %v144_v29, %v138_v27 }
  0xe8   :  { %v162_v37 = vadd.f32 %v160_v32, %v147_v35  ;;  %v163_v38 = vadd.f32 %v160_v32, %v148_v36 }
  0xea   :  { %164 = vst [vmem:[%s232_s4] sm:$0xff] %v162_v37  ;;  %165 = vst [vmem:[%s232_s4 + $0x8] sm:$0xff] %v163_v38 }

// kernel: fno_block_forward.2
= control target key start
LH: loop header
LB: loop body
LE: loop exit
PB: predicated region body
PF: predicated region fallthrough
CT: control target
= control target key end

     0   :  { %vm94_vm0 = vcmask 1041408   ;;  %v5671_v0 = vmov 0.0   ;;  %vm5672_vm1 = vmmov 0   ;;  %vm90_vm2 = vcmask 31744   ;;  %s7281_s3 = inlined_call_operand.vmem [shape: bf16[32,4,4], index: 3, kind: input, shape index: {}]   ;;  %s7282_s0 = inlined_call_operand.vmem [shape: bf16[32,2,4], index: 0, kind: input, shape index: {}]   ;;  %s7283_s4 = inlined_call_operand.vmem [shape: bf16[32,4,4], index: 4, kind: input, shape index: {}]   ;;  %s7284_s1 = inlined_call_operand.vmem [shape: bf16[32,2,4], index: 1, kind: input, shape index: {}]   ;;  %s7285_s5 = inlined_call_operand.vmem [shape: bf16[32,4,4], index: 5, kind: input, shape index: {}]   ;;  %s7286_s2 = inlined_call_operand.vmem [shape: bf16[32,2,4], index: 2, kind: input, shape index: {}]   ;;  %s7287_s6 = inlined_call_operand.vmem [shape: f32[32,2,4], index: 6, kind: output, shape index: {0}]   ;;  %s7288_s7 = inlined_call_operand.vmem [shape: f32[32,2,4], index: 7, kind: output, shape index: {1}]  }
   0x1   :  { %5093 = vmatprep.subr.bf16.mxu0 %v5671_v0  ;;  %5099 = vmatprep.subr.bf16.mxu1 %v5671_v0  ;;  %v58_v1 = vld [vmem:[%s7281_s3] sm:$0x3]  ;;  %v59_v2 = vld [vmem:[%s7281_s3 + $0x2] sm:$0x3]  ;;  %v60_v5 = vld [vmem:[%s7281_s3 + $0x4] sm:$0x3] }
   0x2   :  { %v96_v3 = vsel %vm94_vm0, %v58_v1, 0  ;;  %v142_v4 = vsel %vm94_vm0, %v59_v2, 0  ;;  %5095 = vmatprep.mubr.msk.bf16.mxu0 %vm5672_vm1, %v5671_v0  ;;  %5101 = vmatprep.mubr.msk.bf16.mxu1 %vm5672_vm1, %v5671_v0  ;;  %v26_v6 = vld [vmem:[%s7282_s0] sm:$0x1]  ;;  %v27_v7 = vld [vmem:[%s7282_s0 + $0x1] sm:$0x1] }
   0x3   :  { %5094 = vmatpush3.bf16.msra.mxu0 %v96_v3  ;;  %5100 = vmatpush3.bf16.msra.mxu1 %v142_v4  ;;  %v61_v8 = vld [vmem:[%s7281_s3 + $0x6] sm:$0x3]  ;;  %v188_v9 = vsel %vm94_vm0, %v60_v5, 0  ;;  %v62_v11 = vld [vmem:[%s7281_s3 + $0x8] sm:$0x3]  ;;  %vm4668_vm3 = vcmask 25600  }
   0x4   :  { %5105 = vmatprep.subr.bf16.mxu0 %v5671_v0  ;;  %5111 = vmatprep.subr.bf16.mxu1 %v5671_v0  ;;  %v234_v10 = vsel %vm94_vm0, %v61_v8, 0  ;;  %v63_v12 = vld [vmem:[%s7281_s3 + $0xa] sm:$0x3]  ;;  %v28_v13 = vld [vmem:[%s7282_s0 + $0x2] sm:$0x1]  ;;  %v280_v15 = vsel %vm94_vm0, %v62_v11, 0 }
   0x5   :  { %v29_v14 = vld [vmem:[%s7282_s0 + $0x3] sm:$0x1]  ;;  %v326_v16 = vsel %vm94_vm0, %v63_v12, 0  ;;  %v64_v17 = vld [vmem:[%s7281_s3 + $0xc] sm:$0x3] }
   0x6   :  { %5096 = vmatmul.mubr.msk.bf16.vlgmr.msra.gmra.mrb[0].mxu0 %vm90_vm2, %v26_v6  ;;  %5102 = vmatmul.mubr.msk.bf16.vlgmr.msra.gmra.mrb[0].mxu1 %vm90_vm2, %v27_v7  ;;  %v65_v18 = vld [vmem:[%s7281_s3 + $0xe] sm:$0x3]  ;;  %v30_v19 = vld [vmem:[%s7282_s0 + $0x4] sm:$0x1]  ;;  %v31_v20 = vld [vmem:[%s7282_s0 + $0x5] sm:$0x1] }
   0x7   :  { %5106 = vmatpush3.bf16.msra.mxu0 %v188_v9  ;;  %5112 = vmatpush3.bf16.msra.mxu1 %v234_v10  ;;  %v372_v21 = vsel %vm94_vm0, %v64_v17, 0  ;;  %v418_v22 = vsel %vm94_vm0, %v65_v18, 0  ;;  %v66_v23 = vld [vmem:[%s7281_s3 + $0x10] sm:$0x3]  ;;  %v67_v24 = vld [vmem:[%s7281_s3 + $0x12] sm:$0x3] }
   0x8   :  { %5107 = vmatprep.mubr.msk.bf16.mxu0 %vm5672_vm1, %v5671_v0  ;;  %5113 = vmatprep.mubr.msk.bf16.mxu1 %vm5672_vm1, %v5671_v0  ;;  %v32_v25 = vld [vmem:[%s7282_s0 + $0x6] sm:$0x1]  ;;  %v33_v26 = vld [vmem:[%s7282_s0 + $0x7] sm:$0x1]  ;;  %v464_v27 = vsel %vm94_vm0, %v66_v23, 0  ;;  %v510_v28 = vsel %vm94_vm0, %v67_v24, 0 }
   0x9   :  { %5117 = vmatprep.subr.bf16.mxu0 %v5671_v0  ;;  %5123 = vmatprep.subr.bf16.mxu1 %v5671_v0  ;;  %v68_v29 = vld [vmem:[%s7281_s3 + $0x14] sm:$0x3]  ;;  %v69_v30 = vld [vmem:[%s7281_s3 + $0x16] sm:$0x3]  ;;  %v34_v31 = vld [vmem:[%s7282_s0 + $0x8] sm:$0x1] }
   0xa   :  { %v35_v32 = vld [vmem:[%s7282_s0 + $0x9] sm:$0x1]  ;;  %v556_v33 = vsel %vm94_vm0, %v68_v29, 0  ;;  %v602_v34 = vsel %vm94_vm0, %v69_v30, 0  ;;  %v70_v35 = vld [vmem:[%s7281_s3 + $0x18] sm:$0x3] }
   0xb   :  { %v71_v36 = vld [vmem:[%s7281_s3 + $0x1a] sm:$0x3]  ;;  %v36_v37 = vld [vmem:[%s7282_s0 + $0xa] sm:$0x1]  ;;  %v37_v38 = vld [vmem:[%s7282_s0 + $0xb] sm:$0x1] }
   0xc   :  { %v648_v39 = vsel %vm94_vm0, %v70_v35, 0  ;;  %v694_v40 = vsel %vm94_vm0, %v71_v36, 0  ;;  %v72_v41 = vld [vmem:[%s7281_s3 + $0x1c] sm:$0x3]  ;;  %v73_v42 = vld [vmem:[%s7281_s3 + $0x1e] sm:$0x3] }
   0xd   :  { %v38_v43 = vld [vmem:[%s7282_s0 + $0xc] sm:$0x1]  ;;  %v39_v44 = vld [vmem:[%s7282_s0 + $0xd] sm:$0x1]  ;;  %v740_v45 = vsel %vm94_vm0, %v72_v41, 0  ;;  %v786_v46 = vsel %vm94_vm0, %v73_v42, 0 }
   0xe   :  { %5108 = vmatmul.mubr.msk.bf16.vlgmr.msra.gmra.mrb[4].mxu0 %vm90_vm2, %v28_v13  ;;  %5114 = vmatmul.mubr.msk.bf16.vlgmr.msra.gmra.mrb[4].mxu1 %vm90_vm2, %v29_v14  ;;  %v74_v47 = vld [vmem:[%s7281_s3 + $0x20] sm:$0x3]  ;;  %v75_v48 = vld [vmem:[%s7281_s3 + $0x22] sm:$0x3]  ;;  %v40_v49 = vld [vmem:[%s7282_s0 + $0xe] sm:$0x1] }
   0xf   :  { %5118 = vmatpush3.bf16.msra.mxu0 %v280_v15  ;;  %5124 = vmatpush3.bf16.msra.mxu1 %v326_v16  ;;  %v41_v50 = vld [vmem:[%s7282_s0 + $0xf] sm:$0x1]  ;;  %v832_v51 = vsel %vm94_vm0, %v74_v47, 0  ;;  %v878_v52 = vsel %vm94_vm0, %v75_v48, 0  ;;  %v76_v53 = vld [vmem:[%s7281_s3 + $0x24] sm:$0x3] }
  0x10   :  { %5119 = vmatprep.mubr.msk.bf16.mxu0 %vm5672_vm1, %v5671_v0  ;;  %5125 = vmatprep.mubr.msk.bf16.mxu1 %vm5672_vm1, %v5671_v0  ;;  %v77_v54 = vld [vmem:[%s7281_s3 + $0x26] sm:$0x3]  ;;  %v42_v55 = vld [vmem:[%s7282_s0 + $0x10] sm:$0x1]  ;;  %v43_v56 = vld [vmem:[%s7282_s0 + $0x11] sm:$0x1] }
  0x11   :  { %5129 = vmatprep.subr.bf16.mxu0 %v5671_v0  ;;  %5135 = vmatprep.subr.bf16.mxu1 %v5671_v0  ;;  %v924_v57 = vsel %vm94_vm0, %v76_v53, 0  ;;  %v970_v58 = vsel %vm94_vm0, %v77_v54, 0  ;;  %v78_v59 = vld [vmem:[%s7281_s3 + $0x28] sm:$0x3]  ;;  %v79_v60 = vld [vmem:[%s7281_s3 + $0x2a] sm:$0x3] }
  0x12   :  { %v44_v61 = vld [vmem:[%s7282_s0 + $0x12] sm:$0x1]  ;;  %v45_v62 = vld [vmem:[%s7282_s0 + $0x13] sm:$0x1]  ;;  %v1016_v63 = vsel %vm94_vm0, %v78_v59, 0  ;;  %v1062_v1 = vsel %vm94_vm0, %v79_v60, 0 }
  0x13   :  { %v80_v2 = vld [vmem:[%s7281_s3 + $0x2c] sm:$0x3]  ;;  %v81_v3 = vld [vmem:[%s7281_s3 + $0x2e] sm:$0x3]  ;;  %v46_v4 = vld [vmem:[%s7282_s0 + $0x14] sm:$0x1] }
  0x14   :  { %v47_v5 = vld [vmem:[%s7282_s0 + $0x15] sm:$0x1]  ;;  %v1108_v6 = vsel %vm94_vm0, %v80_v2, 0  ;;  %v1154_v7 = vsel %vm94_vm0, %v81_v3, 0  ;;  %v82_v8 = vld [vmem:[%s7281_s3 + $0x30] sm:$0x3] }
  0x15   :  { %v83_v9 = vld [vmem:[%s7281_s3 + $0x32] sm:$0x3]  ;;  %v48_v10 = vld [vmem:[%s7282_s0 + $0x16] sm:$0x1]  ;;  %v49_v11 = vld [vmem:[%s7282_s0 + $0x17] sm:$0x1] }
  0x16   :  { %5120 = vmatmul.mubr.msk.bf16.vlgmr.msra.gmra.mrb[8].mxu0 %vm90_vm2, %v30_v19  ;;  %5126 = vmatmul.mubr.msk.bf16.vlgmr.msra.gmra.mrb[8].mxu1 %vm90_vm2, %v31_v20  ;;  %v1200_v12 = vsel %vm94_vm0, %v82_v8, 0  ;;  %v1246_v13 = vsel %vm94_vm0, %v83_v9, 0  ;;  %v84_v14 = vld [vmem:[%s7281_s3 + $0x34] sm:$0x3]  ;;  %v85_v15 = vld [vmem:[%s7281_s3 + $0x36] sm:$0x3] }
  0x17   :  { %5130 = vmatpush3.bf16.msra.mxu0 %v372_v21  ;;  %5136 = vmatpush3.bf16.msra.mxu1 %v418_v22  ;;  %v50_v16 = vld [vmem:[%s7282_s0 + $0x18] sm:$0x1]  ;;  %v51_v17 = vld [vmem:[%s7282_s0 + $0x19] sm:$0x1]  ;;  %v1292_v18 = vsel %vm94_vm0, %v84_v14, 0  ;;  %v1338_v19 = vsel %vm94_vm0, %v85_v15, 0 }
  0x18   :  { %5131 = vmatprep.mubr.msk.bf16.mxu0 %vm5672_vm1, %v5671_v0  ;;  %5137 = vmatprep.mubr.msk.bf16.mxu1 %vm5672_vm1, %v5671_v0  ;;  %v86_v20 = vld [vmem:[%s7281_s3 + $0x38] sm:$0x3]  ;;  %v87_v21 = vld [vmem:[%s7281_s3 + $0x3a] sm:$0x3]  ;;  %v55_v29 = vld [vmem:[%s7282_s0 + $0x1d] sm:$0x1] }
  0x19   :  { %5141 = vmatprep.subr.bf16.mxu0 %v5671_v0  ;;  %5147 = vmatprep.subr.bf16.mxu1 %v5671_v0  ;;  %v52_v22 = vld [vmem:[%s7282_s0 + $0x1a] sm:$0x1]  ;;  %v53_v23 = vld [vmem:[%s7282_s0 + $0x1b] sm:$0x1]  ;;  %v1384_v24 = vsel %vm94_vm0, %v86_v20, 0 }
  0x1a   :  { %v57_v35 = vld [vmem:[%s7282_s0 + $0x1f] sm:$0x1]  ;;  %v1565_v41 = vld [vmem:[%s7284_s1 + $0x1] sm:$0x1]  ;;  %v1567_v47 = vld [vmem:[%s7284_s1 + $0x3] sm:$0x1] }
  0x1b   :  { %v1569_v53 = vld [vmem:[%s7284_s1 + $0x5] sm:$0x1]  ;;  %v1571_v59 = vld [vmem:[%s7284_s1 + $0x7] sm:$0x1]  ;;  %v1573_v2 = vld [vmem:[%s7284_s1 + $0x9] sm:$0x1] }
  0x1c   :  { %v1575_v8 = vld [vmem:[%s7284_s1 + $0xb] sm:$0x1]  ;;  %v1577_v14 = vld [vmem:[%s7284_s1 + $0xd] sm:$0x1]  ;;  %v1579_v20 = vld [vmem:[%s7284_s1 + $0xf] sm:$0x1] }
  0x1e   :  { %5132 = vmatmul.mubr.msk.bf16.vlgmr.msra.gmra.mrb[12].mxu0 %vm90_vm2, %v32_v25  ;;  %5138 = vmatmul.mubr.msk.bf16.vlgmr.msra.gmra.mrb[12].mxu1 %vm90_vm2, %v33_v26  ;;  %v1430_v25 = vsel %vm94_vm0, %v87_v21, 0  ;;  %v88_v26 = vld [vmem:[%s7281_s3 + $0x3c] sm:$0x3] }
  0x1f   :  { %5142 = vmatpush3.bf16.msra.mxu0 %v464_v27  ;;  %5148 = vmatpush3.bf16.msra.mxu1 %v510_v28  ;;  %v89_v27 = vld [vmem:[%s7281_s3 + $0x3e] sm:$0x3]  ;;  %v54_v28 = vld [vmem:[%s7282_s0 + $0x1c] sm:$0x1]  ;;  %v1476_v30 = vsel %vm94_vm0, %v88_v26, 0 }
  0x20   :  { %5143 = vmatprep.mubr.msk.bf16.mxu0 %vm5672_vm1, %v5671_v0  ;;  %5149 = vmatprep.mubr.msk.bf16.mxu1 %vm5672_vm1, %v5671_v0  ;;  %v1581_v26 = vld [vmem:[%s7284_s1 + $0x11] sm:$0x1] }
  0x21   :  { %5153 = vmatprep.subr.bf16.mxu0 %v5671_v0  ;;  %5159 = vmatprep.subr.bf16.mxu1 %v5671_v0 }
  0x26   :  { %5144 = vmatmul.mubr.msk.bf16.vlgmr.msra.gmra.mrb[16].mxu0 %vm90_vm2, %v34_v31  ;;  %5150 = vmatmul.mubr.msk.bf16.vlgmr.msra.gmra.mrb[16].mxu1 %vm90_vm2, %v35_v32  ;;  %v1522_v31 = vsel %vm94_vm0, %v89_v27, 0  ;;  %v1596_v32 = vld [vmem:[%s7283_s4] sm:$0x3] }
  0x27   :  { %5154 = vmatpush3.bf16.msra.mxu0 %v556_v33  ;;  %5160 = vmatpush3.bf16.msra.mxu1 %v602_v34  ;;  %v1597_v33 = vld [vmem:[%s7283_s4 + $0x2] sm:$0x3]  ;;  %v56_v34 = vld [vmem:[%s7282_s0 + $0x1e] sm:$0x1]  ;;  %v1632_v36 = vsel %vm94_vm0, %v1596_v32, 0 }
  0x28   :  { %5155 = vmatprep.mubr.msk.bf16.mxu0 %vm5672_vm1, %v5671_v0  ;;  %5161 = vmatprep.mubr.msk.bf16.mxu1 %vm5672_vm1, %v5671_v0  ;;  %v1583_v32 = vld [vmem:[%s7284_s1 + $0x13] sm:$0x1] }
  0x29   :  { %5165 = vmatprep.subr.bf16.mxu0 %v5671_v0  ;;  %5171 = vmatprep.subr.bf16.mxu1 %v5671_v0 }
  0x2e   :  { %5156 = vmatmul.mubr.msk.bf16.vlgmr.msra.gmra.mrb[20].mxu0 %vm90_vm2, %v36_v37  ;;  %5162 = vmatmul.mubr.msk.bf16.vlgmr.msra.gmra.mrb[20].mxu1 %vm90_vm2, %v37_v38  ;;  %v1678_v37 = vsel %vm94_vm0, %v1597_v33, 0  ;;  %v1598_v38 = vld [vmem:[%s7283_s4 + $0x4] sm:$0x3] }
  0x2f   :  { %5166 = vmatpush3.bf16.msra.mxu0 %v648_v39  ;;  %5172 = vmatpush3.bf16.msra.mxu1 %v694_v40  ;;  %v1599_v39 = vld [vmem:[%s7283_s4 + $0x6] sm:$0x3]  ;;  %v1564_v40 = vld [vmem:[%s7284_s1] sm:$0x1]  ;;  %v1724_v42 = vsel %vm94_vm0, %v1598_v38, 0 }
  0x30   :  { %5167 = vmatprep.mubr.msk.bf16.mxu0 %vm5672_vm1, %v5671_v0  ;;  %5173 = vmatprep.mubr.msk.bf16.mxu1 %vm5672_vm1, %v5671_v0  ;;  %v1585_v38 = vld [vmem:[%s7284_s1 + $0x15] sm:$0x1] }
  0x31   :  { %5177 = vmatprep.subr.bf16.mxu0 %v5671_v0  ;;  %5183 = vmatprep.subr.bf16.mxu1 %v5671_v0 }
  0x36   :  { %5168 = vmatmul.mubr.msk.bf16.vlgmr.msra.gmra.mrb[24].mxu0 %vm90_vm2, %v38_v43  ;;  %5174 = vmatmul.mubr.msk.bf16.vlgmr.msra.gmra.mrb[24].mxu1 %vm90_vm2, %v39_v44  ;;  %v1770_v43 = vsel %vm94_vm0, %v1599_v39, 0  ;;  %v1600_v44 = vld [vmem:[%s7283_s4 + $0x8] sm:$0x3] }
  0x37   :  { %5178 = vmatpush3.bf16.msra.mxu0 %v740_v45  ;;  %5184 = vmatpush3.bf16.msra.mxu1 %v786_v46  ;;  %v1601_v45 = vld [vmem:[%s7283_s4 + $0xa] sm:$0x3]  ;;  %v1566_v46 = vld [vmem:[%s7284_s1 + $0x2] sm:$0x1]  ;;  %v1816_v48 = vsel %vm94_vm0, %v1600_v44, 0 }
  0x38   :  { %5179 = vmatprep.mubr.msk.bf16.mxu0 %vm5672_vm1, %v5671_v0  ;;  %5185 = vmatprep.mubr.msk.bf16.mxu1 %vm5672_vm1, %v5671_v0  ;;  %v1621_v44 = vld [vmem:[%s7283_s4 + $0x32] sm:$0x3] }
  0x39   :  { %5189 = vmatprep.subr.bf16.mxu0 %v5671_v0  ;;  %5195 = vmatprep.subr.bf16.mxu1 %v5671_v0 }
  0x3e   :  { %5180 = vmatmul.mubr.msk.bf16.vlgmr.msra.gmra.mrb[28].mxu0 %vm90_vm2, %v40_v49  ;;  %5186 = vmatmul.mubr.msk.bf16.vlgmr.msra.gmra.mrb[28].mxu1 %vm90_vm2, %v41_v50  ;;  %v1862_v49 = vsel %vm94_vm0, %v1601_v45, 0  ;;  %v1602_v50 = vld [vmem:[%s7283_s4 + $0xc] sm:$0x3] }
  0x3f   :  { %5190 = vmatpush3.bf16.msra.mxu0 %v832_v51  ;;  %5196 = vmatpush3.bf16.msra.mxu1 %v878_v52  ;;  %v1603_v51 = vld [vmem:[%s7283_s4 + $0xe] sm:$0x3]  ;;  %v1568_v52 = vld [vmem:[%s7284_s1 + $0x4] sm:$0x1]  ;;  %v1908_v54 = vsel %vm94_vm0, %v1602_v50, 0 }
  0x40   :  { %5191 = vmatprep.mubr.msk.bf16.mxu0 %vm5672_vm1, %v5671_v0  ;;  %5197 = vmatprep.mubr.msk.bf16.mxu1 %vm5672_vm1, %v5671_v0  ;;  %v1587_v50 = vld [vmem:[%s7284_s1 + $0x17] sm:$0x1] }
  0x41   :  { %5201 = vmatprep.subr.bf16.mxu0 %v5671_v0  ;;  %5207 = vmatprep.subr.bf16.mxu1 %v5671_v0 }
  0x46   :  { %5192 = vmatmul.mubr.msk.bf16.vlgmr.msra.gmra.mrb[32].mxu0 %vm90_vm2, %v42_v55  ;;  %5198 = vmatmul.mubr.msk.bf16.vlgmr.msra.gmra.mrb[32].mxu1 %vm90_vm2, %v43_v56  ;;  %v1954_v55 = vsel %vm94_vm0, %v1603_v51, 0  ;;  %v1604_v56 = vld [vmem:[%s7283_s4 + $0x10] sm:$0x3] }
  0x47   :  { %5202 = vmatpush3.bf16.msra.mxu0 %v924_v57  ;;  %5208 = vmatpush3.bf16.msra.mxu1 %v970_v58  ;;  %v1605_v57 = vld [vmem:[%s7283_s4 + $0x12] sm:$0x3]  ;;  %v1570_v58 = vld [vmem:[%s7284_s1 + $0x6] sm:$0x1]  ;;  %v2000_v60 = vsel %vm94_vm0, %v1604_v56, 0 }
  0x48   :  { %5203 = vmatprep.mubr.msk.bf16.mxu0 %vm5672_vm1, %v5671_v0  ;;  %5209 = vmatprep.mubr.msk.bf16.mxu1 %vm5672_vm1, %v5671_v0 }
  0x49   :  { %5213 = vmatprep.subr.bf16.mxu0 %v5671_v0  ;;  %5219 = vmatprep.subr.bf16.mxu1 %v5671_v0 }
  0x4e   :  { %5204 = vmatmul.mubr.msk.bf16.vlgmr.msra.gmra.mrb[36].mxu0 %vm90_vm2, %v44_v61  ;;  %5210 = vmatmul.mubr.msk.bf16.vlgmr.msra.gmra.mrb[36].mxu1 %vm90_vm2, %v45_v62  ;;  %v2046_v61 = vsel %vm94_vm0, %v1605_v57, 0  ;;  %v1606_v62 = vld [vmem:[%s7283_s4 + $0x14] sm:$0x3] }
  0x4f   :  { %5214 = vmatpush3.bf16.msra.mxu0 %v1016_v63  ;;  %5220 = vmatpush3.bf16.msra.mxu1 %v1062_v1  ;;  %v1607_v63 = vld [vmem:[%s7283_s4 + $0x16] sm:$0x3]  ;;  %v1572_v1 = vld [vmem:[%s7284_s1 + $0x8] sm:$0x1]  ;;  %v2092_v3 = vsel %vm94_vm0, %v1606_v62, 0 }
  0x50   :  { %5215 = vmatprep.mubr.msk.bf16.mxu0 %vm5672_vm1, %v5671_v0  ;;  %5221 = vmatprep.mubr.msk.bf16.mxu1 %vm5672_vm1, %v5671_v0  ;;  %v1622_v57 = vld [vmem:[%s7283_s4 + $0x34] sm:$0x3] }
  0x51   :  { %5225 = vmatprep.subr.bf16.mxu0 %v5671_v0  ;;  %5231 = vmatprep.subr.bf16.mxu1 %v5671_v0 }
  0x56   :  { %5216 = vmatmul.mubr.msk.bf16.vlgmr.msra.gmra.mrb[40].mxu0 %vm90_vm2, %v46_v4  ;;  %5222 = vmatmul.mubr.msk.bf16.vlgmr.msra.gmra.mrb[40].mxu1 %vm90_vm2, %v47_v5  ;;  %v2138_v4 = vsel %vm94_vm0, %v1607_v63, 0  ;;  %v1608_v5 = vld [vmem:[%s7283_s4 + $0x18] sm:$0x3] }
  0x57   :  { %5226 = vmatpush3.bf16.msra.mxu0 %v1108_v6  ;;  %5232 = vmatpush3.bf16.msra.mxu1 %v1154_v7  ;;  %v1609_v6 = vld [vmem:[%s7283_s4 + $0x1a] sm:$0x3]  ;;  %v1574_v7 = vld [vmem:[%s7284_s1 + $0xa] sm:$0x1]  ;;  %v2184_v9 = vsel %vm94_vm0, %v1608_v5, 0 }
  0x58   :  { %5227 = vmatprep.mubr.msk.bf16.mxu0 %vm5672_vm1, %v5671_v0  ;;  %5233 = vmatprep.mubr.msk.bf16.mxu1 %vm5672_vm1, %v5671_v0  ;;  %v1588_v63 = vld [vmem:[%s7284_s1 + $0x18] sm:$0x1] }
  0x59   :  { %5237 = vmatprep.subr.bf16.mxu0 %v5671_v0  ;;  %5243 = vmatprep.subr.bf16.mxu1 %v5671_v0 }
  0x5e   :  { %5228 = vmatmul.mubr.msk.bf16.vlgmr.msra.gmra.mrb[44].mxu0 %vm90_vm2, %v48_v10  ;;  %5234 = vmatmul.mubr.msk.bf16.vlgmr.msra.gmra.mrb[44].mxu1 %vm90_vm2, %v49_v11  ;;  %v2230_v10 = vsel %vm94_vm0, %v1609_v6, 0  ;;  %v1610_v11 = vld [vmem:[%s7283_s4 + $0x1c] sm:$0x3] }
  0x5f   :  { %5238 = vmatpush3.bf16.msra.mxu0 %v1200_v12  ;;  %5244 = vmatpush3.bf16.msra.mxu1 %v1246_v13  ;;  %v1611_v12 = vld [vmem:[%s7283_s4 + $0x1e] sm:$0x3]  ;;  %v1576_v13 = vld [vmem:[%s7284_s1 + $0xc] sm:$0x1]  ;;  %v2276_v15 = vsel %vm94_vm0, %v1610_v11, 0 }
  0x60   :  { %5239 = vmatprep.mubr.msk.bf16.mxu0 %vm5672_vm1, %v5671_v0  ;;  %5245 = vmatprep.mubr.msk.bf16.mxu1 %vm5672_vm1, %v5671_v0 }
  0x61   :  { %5249 = vmatprep.subr.bf16.mxu0 %v5671_v0  ;;  %5255 = vmatprep.subr.bf16.mxu1 %v5671_v0 }
  0x66   :  { %5240 = vmatmul.mubr.msk.bf16.vlgmr.msra.gmra.mrb[48].mxu0 %vm90_vm2, %v50_v16  ;;  %5246 = vmatmul.mubr.msk.bf16.vlgmr.msra.gmra.mrb[48].mxu1 %vm90_vm2, %v51_v17  ;;  %v2322_v16 = vsel %vm94_vm0, %v1611_v12, 0  ;;  %v1612_v17 = vld [vmem:[%s7283_s4 + $0x20] sm:$0x3] }
  0x67   :  { %5250 = vmatpush3.bf16.msra.mxu0 %v1292_v18  ;;  %5256 = vmatpush3.bf16.msra.mxu1 %v1338_v19  ;;  %v1613_v18 = vld [vmem:[%s7283_s4 + $0x22] sm:$0x3]  ;;  %v1578_v19 = vld [vmem:[%s7284_s1 + $0xe] sm:$0x1]  ;;  %v2368_v21 = vsel %vm94_vm0, %v1612_v17, 0 }
  0x68   :  { %5251 = vmatprep.mubr.msk.bf16.mxu0 %vm5672_vm1, %v5671_v0  ;;  %5257 = vmatprep.mubr.msk.bf16.mxu1 %vm5672_vm1, %v5671_v0 }
  0x69   :  { %5261 = vmatprep.subr.bf16.mxu0 %v5671_v0  ;;  %5267 = vmatprep.subr.bf16.mxu1 %v5671_v0 }
  0x6e   :  { %5252 = vmatmul.mubr.msk.bf16.vlgmr.msra.gmra.mrb[52].mxu0 %vm90_vm2, %v52_v22  ;;  %5258 = vmatmul.mubr.msk.bf16.vlgmr.msra.gmra.mrb[52].mxu1 %vm90_vm2, %v53_v23  ;;  %v2414_v22 = vsel %vm94_vm0, %v1613_v18, 0  ;;  %v1614_v23 = vld [vmem:[%s7283_s4 + $0x24] sm:$0x3] }
  0x6f   :  { %5262 = vmatpush3.bf16.msra.mxu0 %v1384_v24  ;;  %5268 = vmatpush3.bf16.msra.mxu1 %v1430_v25  ;;  %v1615_v24 = vld [vmem:[%s7283_s4 + $0x26] sm:$0x3]  ;;  %v1580_v25 = vld [vmem:[%s7284_s1 + $0x10] sm:$0x1]  ;;  %v2460_v27 = vsel %vm94_vm0, %v1614_v23, 0 }
  0x70   :  { %5263 = vmatprep.mubr.msk.bf16.mxu0 %vm5672_vm1, %v5671_v0  ;;  %5269 = vmatprep.mubr.msk.bf16.mxu1 %vm5672_vm1, %v5671_v0  ;;  %v1627_v23 = vld [vmem:[%s7283_s4 + $0x3e] sm:$0x3] }
  0x71   :  { %5273 = vmatprep.subr.bf16.mxu0 %v5671_v0  ;;  %5279 = vmatprep.subr.bf16.mxu1 %v5671_v0 }
  0x76   :  { %5264 = vmatmul.mubr.msk.bf16.vlgmr.msra.gmra.mrb[56].mxu0 %vm90_vm2, %v54_v28  ;;  %5270 = vmatmul.mubr.msk.bf16.vlgmr.msra.gmra.mrb[56].mxu1 %vm90_vm2, %v55_v29  ;;  %v2506_v28 = vsel %vm94_vm0, %v1615_v24, 0  ;;  %v1616_v29 = vld [vmem:[%s7283_s4 + $0x28] sm:$0x3] }
  0x77   :  { %5274 = vmatpush3.bf16.msra.mxu0 %v1476_v30  ;;  %5280 = vmatpush3.bf16.msra.mxu1 %v1522_v31  ;;  %v1617_v30 = vld [vmem:[%s7283_s4 + $0x2a] sm:$0x3]  ;;  %v1582_v31 = vld [vmem:[%s7284_s1 + $0x12] sm:$0x1]  ;;  %v2552_v33 = vsel %vm94_vm0, %v1616_v29, 0 }
  0x78   :  { %5275 = vmatprep.mubr.msk.bf16.mxu0 %vm5672_vm1, %v5671_v0  ;;  %5281 = vmatprep.mubr.msk.bf16.mxu1 %vm5672_vm1, %v5671_v0  ;;  %v1593_v29 = vld [vmem:[%s7284_s1 + $0x1d] sm:$0x1] }
  0x79   :  { %5285 = vmatprep.subr.bf16.mxu0 %v5671_v0  ;;  %5291 = vmatprep.subr.bf16.mxu1 %v5671_v0 }
  0x7e   :  { %5276 = vmatmul.mubr.msk.bf16.vlgmr.msra.gmra.mrb[60].mxu0 %vm90_vm2, %v56_v34  ;;  %5282 = vmatmul.mubr.msk.bf16.vlgmr.msra.gmra.mrb[60].mxu1 %vm90_vm2, %v57_v35  ;;  %v2598_v34 = vsel %vm94_vm0, %v1617_v30, 0  ;;  %v1618_v35 = vld [vmem:[%s7283_s4 + $0x2c] sm:$0x3] }
  0x7f   :  { %5286 = vmatpush3.bf16.msra.mxu0 %v1632_v36  ;;  %5292 = vmatpush3.bf16.msra.mxu1 %v1678_v37  ;;  %v1619_v36 = vld [vmem:[%s7283_s4 + $0x2e] sm:$0x3]  ;;  %v1584_v37 = vld [vmem:[%s7284_s1 + $0x14] sm:$0x1]  ;;  %v2644_v39 = vsel %vm94_vm0, %v1618_v35, 0 }
  0x80   :  { %5287 = vmatprep.mubr.msk.bf16.mxu0 %vm5672_vm1, %v5671_v0  ;;  %5293 = vmatprep.mubr.msk.bf16.mxu1 %vm5672_vm1, %v5671_v0 }
  0x81   :  { %5297 = vmatprep.subr.bf16.mxu0 %v5671_v0  ;;  %5303 = vmatprep.subr.bf16.mxu1 %v5671_v0 }
  0x86   :  { %5288 = vmatmul.mubr.msk.bf16.vlgmr.msra.gmra.mrb[64].mxu0 %vm90_vm2, %v1564_v40  ;;  %5294 = vmatmul.mubr.msk.bf16.vlgmr.msra.gmra.mrb[64].mxu1 %vm90_vm2, %v1565_v41  ;;  %v2690_v40 = vsel %vm94_vm0, %v1619_v36, 0  ;;  %v3132_v36 = vld [vmem:[%s7285_s5] sm:$0x3] }
  0x87   :  { %5298 = vmatpush3.bf16.msra.mxu0 %v1724_v42  ;;  %5304 = vmatpush3.bf16.msra.mxu1 %v1770_v43  ;;  %v1620_v43 = vld [vmem:[%s7283_s4 + $0x30] sm:$0x3] }
  0x88   :  { %5299 = vmatprep.mubr.msk.bf16.mxu0 %vm5672_vm1, %v5671_v0  ;;  %5305 = vmatprep.mubr.msk.bf16.mxu1 %vm5672_vm1, %v5671_v0 }
  0x89   :  { %5309 = vmatprep.subr.bf16.mxu0 %v5671_v0  ;;  %5315 = vmatprep.subr.bf16.mxu1 %v5671_v0 }
  0x8e   :  { %5300 = vmatmul.mubr.msk.bf16.vlgmr.msra.gmra.mrb[68].mxu0 %vm90_vm2, %v1566_v46  ;;  %5306 = vmatmul.mubr.msk.bf16.vlgmr.msra.gmra.mrb[68].mxu1 %vm90_vm2, %v1567_v47 }
  0x8f   :  { %5310 = vmatpush3.bf16.msra.mxu0 %v1816_v48  ;;  %5316 = vmatpush3.bf16.msra.mxu1 %v1862_v49  ;;  %v1586_v49 = vld [vmem:[%s7284_s1 + $0x16] sm:$0x1] }
  0x90   :  { %5311 = vmatprep.mubr.msk.bf16.mxu0 %vm5672_vm1, %v5671_v0  ;;  %5317 = vmatprep.mubr.msk.bf16.mxu1 %vm5672_vm1, %v5671_v0 }
  0x91   :  { %5321 = vmatprep.subr.bf16.mxu0 %v5671_v0  ;;  %5327 = vmatprep.subr.bf16.mxu1 %v5671_v0 }
  0x96   :  { %5312 = vmatmul.mubr.msk.bf16.vlgmr.msra.gmra.mrb[72].mxu0 %vm90_vm2, %v1568_v52  ;;  %5318 = vmatmul.mubr.msk.bf16.vlgmr.msra.gmra.mrb[72].mxu1 %vm90_vm2, %v1569_v53  ;;  %v2736_v53 = vsel %vm94_vm0, %v1620_v43, 0 }
  0x97   :  { %5322 = vmatpush3.bf16.msra.mxu0 %v1908_v54  ;;  %5328 = vmatpush3.bf16.msra.mxu1 %v1954_v55  ;;  %v2782_v54 = vsel %vm94_vm0, %v1621_v44, 0  ;;  %v1594_v44 = vld [vmem:[%s7284_s1 + $0x1e] sm:$0x1] }
  0x98   :  { %5323 = vmatprep.mubr.msk.bf16.mxu0 %vm5672_vm1, %v5671_v0  ;;  %5329 = vmatprep.mubr.msk.bf16.mxu1 %vm5672_vm1, %v5671_v0 }
  0x99   :  { %5333 = vmatprep.subr.bf16.mxu0 %v5671_v0  ;;  %5339 = vmatprep.subr.bf16.mxu1 %v5671_v0 }
  0x9e   :  { %5324 = vmatmul.mubr.msk.bf16.vlgmr.msra.gmra.mrb[76].mxu0 %vm90_vm2, %v1570_v58  ;;  %5330 = vmatmul.mubr.msk.bf16.vlgmr.msra.gmra.mrb[76].mxu1 %vm90_vm2, %v1571_v59  ;;  %v1623_v58 = vld [vmem:[%s7283_s4 + $0x36] sm:$0x3] }
  0x9f   :  { %5334 = vmatpush3.bf16.msra.mxu0 %v2000_v60  ;;  %5340 = vmatpush3.bf16.msra.mxu1 %v2046_v61  ;;  %v2874_v5 = vsel %vm94_vm0, %v1623_v58, 0 }
  0xa0   :  { %5335 = vmatprep.mubr.msk.bf16.mxu0 %vm5672_vm1, %v5671_v0  ;;  %5341 = vmatprep.mubr.msk.bf16.mxu1 %vm5672_vm1, %v5671_v0 }
  0xa1   :  { %5345 = vmatprep.subr.bf16.mxu0 %v5671_v0  ;;  %5351 = vmatprep.subr.bf16.mxu1 %v5671_v0 }
  0xa6   :  { %5336 = vmatmul.mubr.msk.bf16.vlgmr.msra.gmra.mrb[80].mxu0 %vm90_vm2, %v1572_v1  ;;  %5342 = vmatmul.mubr.msk.bf16.vlgmr.msra.gmra.mrb[80].mxu1 %vm90_vm2, %v1573_v2  ;;  %v1589_v1 = vld [vmem:[%s7284_s1 + $0x19] sm:$0x1] }
  0xa7   :  { %5346 = vmatpush3.bf16.msra.mxu0 %v2092_v3  ;;  %5352 = vmatpush3.bf16.msra.mxu1 %v2138_v4  ;;  %v2828_v4 = vsel %vm94_vm0, %v1622_v57, 0 }
  0xa8   :  { %5347 = vmatprep.mubr.msk.bf16.mxu0 %vm5672_vm1, %v5671_v0  ;;  %5353 = vmatprep.mubr.msk.bf16.mxu1 %vm5672_vm1, %v5671_v0 }
  0xa9   :  { %5357 = vmatprep.subr.bf16.mxu0 %v5671_v0  ;;  %5363 = vmatprep.subr.bf16.mxu1 %v5671_v0 }
  0xae   :  { %5348 = vmatmul.mubr.msk.bf16.vlgmr.msra.gmra.mrb[84].mxu0 %vm90_vm2, %v1574_v7  ;;  %5354 = vmatmul.mubr.msk.bf16.vlgmr.msra.gmra.mrb[84].mxu1 %vm90_vm2, %v1575_v8  ;;  %v1624_v8 = vld [vmem:[%s7283_s4 + $0x38] sm:$0x3] }
  0xaf   :  { %5358 = vmatpush3.bf16.msra.mxu0 %v2184_v9  ;;  %5364 = vmatpush3.bf16.msra.mxu1 %v2230_v10  ;;  %v1625_v9 = vld [vmem:[%s7283_s4 + $0x3a] sm:$0x3]  ;;  %v2920_v18 = vsel %vm94_vm0, %v1624_v8, 0  ;;  %v3137_v8 = vld [vmem:[%s7285_s5 + $0xa] sm:$0x3] }
  0xb0   :  { %5359 = vmatprep.mubr.msk.bf16.mxu0 %vm5672_vm1, %v5671_v0  ;;  %5365 = vmatprep.mubr.msk.bf16.mxu1 %vm5672_vm1, %v5671_v0 }
  0xb1   :  { %5369 = vmatprep.subr.bf16.mxu0 %v5671_v0  ;;  %5375 = vmatprep.subr.bf16.mxu1 %v5671_v0 }
  0xb6   :  { %5360 = vmatmul.mubr.msk.bf16.vlgmr.msra.gmra.mrb[88].mxu0 %vm90_vm2, %v1576_v13  ;;  %5366 = vmatmul.mubr.msk.bf16.vlgmr.msra.gmra.mrb[88].mxu1 %vm90_vm2, %v1577_v14  ;;  %v1590_v14 = vld [vmem:[%s7284_s1 + $0x1a] sm:$0x1] }
  0xb7   :  { %5370 = vmatpush3.bf16.msra.mxu0 %v2276_v15  ;;  %5376 = vmatpush3.bf16.msra.mxu1 %v2322_v16  ;;  %v1591_v15 = vld [vmem:[%s7284_s1 + $0x1b] sm:$0x1] }
  0xb8   :  { %5371 = vmatprep.mubr.msk.bf16.mxu0 %vm5672_vm1, %v5671_v0  ;;  %5377 = vmatprep.mubr.msk.bf16.mxu1 %vm5672_vm1, %v5671_v0 }
  0xb9   :  { %5381 = vmatprep.subr.bf16.mxu0 %v5671_v0  ;;  %5387 = vmatprep.subr.bf16.mxu1 %v5671_v0 }
  0xbe   :  { %5372 = vmatmul.mubr.msk.bf16.vlgmr.msra.gmra.mrb[92].mxu0 %vm90_vm2, %v1578_v19  ;;  %5378 = vmatmul.mubr.msk.bf16.vlgmr.msra.gmra.mrb[92].mxu1 %vm90_vm2, %v1579_v20  ;;  %v2966_v19 = vsel %vm94_vm0, %v1625_v9, 0 }
  0xbf   :  { %5382 = vmatpush3.bf16.msra.mxu0 %v2368_v21  ;;  %5388 = vmatpush3.bf16.msra.mxu1 %v2414_v22  ;;  %v1626_v22 = vld [vmem:[%s7283_s4 + $0x3c] sm:$0x3] }
  0xc0   :  { %5383 = vmatprep.mubr.msk.bf16.mxu0 %vm5672_vm1, %v5671_v0  ;;  %5389 = vmatprep.mubr.msk.bf16.mxu1 %vm5672_vm1, %v5671_v0 }
  0xc1   :  { %5393 = vmatprep.subr.bf16.mxu0 %v5671_v0  ;;  %5399 = vmatprep.subr.bf16.mxu1 %v5671_v0 }
  0xc6   :  { %5384 = vmatmul.mubr.msk.bf16.vlgmr.msra.gmra.mrb[96].mxu0 %vm90_vm2, %v1580_v25  ;;  %5390 = vmatmul.mubr.msk.bf16.vlgmr.msra.gmra.mrb[96].mxu1 %vm90_vm2, %v1581_v26 }
  0xc7   :  { %5394 = vmatpush3.bf16.msra.mxu0 %v2460_v27  ;;  %5400 = vmatpush3.bf16.msra.mxu1 %v2506_v28  ;;  %v1592_v28 = vld [vmem:[%s7284_s1 + $0x1c] sm:$0x1] }
  0xc8   :  { %5395 = vmatprep.mubr.msk.bf16.mxu0 %vm5672_vm1, %v5671_v0  ;;  %5401 = vmatprep.mubr.msk.bf16.mxu1 %vm5672_vm1, %v5671_v0 }
  0xc9   :  { %5405 = vmatprep.subr.bf16.mxu0 %v5671_v0  ;;  %5411 = vmatprep.subr.bf16.mxu1 %v5671_v0 }
  0xce   :  { %5396 = vmatmul.mubr.msk.bf16.vlgmr.msra.gmra.mrb[100].mxu0 %vm90_vm2, %v1582_v31  ;;  %5402 = vmatmul.mubr.msk.bf16.vlgmr.msra.gmra.mrb[100].mxu1 %vm90_vm2, %v1583_v32  ;;  %v3012_v32 = vsel %vm94_vm0, %v1626_v22, 0 }
  0xcf   :  { %5406 = vmatpush3.bf16.msra.mxu0 %v2552_v33  ;;  %5412 = vmatpush3.bf16.msra.mxu1 %v2598_v34  ;;  %v3058_v33 = vsel %vm94_vm0, %v1627_v23, 0  ;;  %v3138_v23 = vld [vmem:[%s7285_s5 + $0xc] sm:$0x3] }
  0xd0   :  { %5407 = vmatprep.mubr.msk.bf16.mxu0 %vm5672_vm1, %v5671_v0  ;;  %5413 = vmatprep.mubr.msk.bf16.mxu1 %vm5672_vm1, %v5671_v0 }
  0xd1   :  { %5417 = vmatprep.subr.bf16.mxu0 %v5671_v0  ;;  %5423 = vmatprep.subr.bf16.mxu1 %v5671_v0 }
  0xd6   :  { %5408 = vmatmul.mubr.msk.bf16.vlgmr.msra.gmra.mrb[104].mxu0 %vm90_vm2, %v1584_v37  ;;  %5414 = vmatmul.mubr.msk.bf16.vlgmr.msra.gmra.mrb[104].mxu1 %vm90_vm2, %v1585_v38  ;;  %v3133_v37 = vld [vmem:[%s7285_s5 + $0x2] sm:$0x3] }
  0xd7   :  { %5418 = vmatpush3.bf16.msra.mxu0 %v2644_v39  ;;  %5424 = vmatpush3.bf16.msra.mxu1 %v2690_v40 }
  0xd8   :  { %5419 = vmatprep.mubr.msk.bf16.mxu0 %vm5672_vm1, %v5671_v0  ;;  %5425 = vmatprep.mubr.msk.bf16.mxu1 %vm5672_vm1, %v5671_v0 }
  0xd9   :  { %v6321_v41 = vpop.f32.mrb[0].mxu0  ;;  %v6323_v42 = vpop.f32.mrb[0].mxu1  ;;  %5429 = vmatprep.subr.bf16.mxu0 %v5671_v0  ;;  %5435 = vmatprep.subr.bf16.mxu1 %v5671_v0 }
  0xda   :  { %v5097_v45 = vpop.f32.mrb[1].mxu0  ;;  %v5103_v46 = vpop.f32.mrb[1].mxu1 }
  0xdb   :  { %v135_v47 = vpop.f32.mrb[2].mxu0  ;;  %v181_v48 = vpop.f32.mrb[2].mxu1  ;;  %v1595_v45 = vld [vmem:[%s7284_s1 + $0x1f] sm:$0x1] }
  0xdc   :  { %v5098_v51 = vpop.f32.mrb[3].mxu0  ;;  %v5104_v52 = vpop.f32.mrb[3].mxu1  ;;  %v3168_v48 = vsel %vm94_vm0, %v3132_v36, 0 }
  0xdd   :  { %v3134_v52 = vld [vmem:[%s7285_s5 + $0x4] sm:$0x3] }
  0xde   :  { %5420 = vmatmul.mubr.msk.bf16.vlgmr.msra.gmra.mrb[108].mxu0 %vm90_vm2, %v1586_v49  ;;  %5426 = vmatmul.mubr.msk.bf16.vlgmr.msra.gmra.mrb[108].mxu1 %vm90_vm2, %v1587_v50  ;;  %v3214_v49 = vsel %vm94_vm0, %v3133_v37, 0 }
  0xdf   :  { %5430 = vmatpush3.bf16.msra.mxu0 %v2736_v53  ;;  %5436 = vmatpush3.bf16.msra.mxu1 %v2782_v54  ;;  %v3135_v53 = vld [vmem:[%s7285_s5 + $0x6] sm:$0x3] }
  0xe0   :  { %5431 = vmatprep.mubr.msk.bf16.mxu0 %vm5672_vm1, %v5671_v0  ;;  %5437 = vmatprep.mubr.msk.bf16.mxu1 %vm5672_vm1, %v5671_v0 }
  0xe1   :  { %v6347_v55 = vpop.f32.mrb[4].mxu0  ;;  %v6349_v56 = vpop.f32.mrb[4].mxu1  ;;  %5441 = vmatprep.subr.bf16.mxu0 %v5671_v0  ;;  %5447 = vmatprep.subr.bf16.mxu1 %v5671_v0 }
  0xe2   :  { %v5109_v59 = vpop.f32.mrb[5].mxu0  ;;  %v5115_v60 = vpop.f32.mrb[5].mxu1 }
  0xe3   :  { %v227_v61 = vpop.f32.mrb[6].mxu0  ;;  %v273_v62 = vpop.f32.mrb[6].mxu1  ;;  %v3100_v60 = vld [vmem:[%s7286_s2] sm:$0x1] }
  0xe4   :  { %v5110_v2 = vpop.f32.mrb[7].mxu0  ;;  %v5116_v3 = vpop.f32.mrb[7].mxu1  ;;  %v3101_v61 = vld [vmem:[%s7286_s2 + $0x1] sm:$0x1] }
  0xe5   :  { %v3306_v2 = vsel %vm94_vm0, %v3135_v53, 0 }
  0xe6   :  { %5432 = vmatmul.mubr.msk.bf16.vlgmr.msra.gmra.mrb[112].mxu0 %vm90_vm2, %v1588_v63  ;;  %5438 = vmatmul.mubr.msk.bf16.vlgmr.msra.gmra.mrb[112].mxu1 %vm90_vm2, %v1589_v1  ;;  %v3260_v1 = vsel %vm94_vm0, %v3134_v52, 0 }
  0xe7   :  { %5442 = vmatpush3.bf16.msra.mxu0 %v2828_v4  ;;  %5448 = vmatpush3.bf16.msra.mxu1 %v2874_v5  ;;  %v3136_v5 = vld [vmem:[%s7285_s5 + $0x8] sm:$0x3] }
  0xe8   :  { %5443 = vmatprep.mubr.msk.bf16.mxu0 %vm5672_vm1, %v5671_v0  ;;  %5449 = vmatprep.mubr.msk.bf16.mxu1 %vm5672_vm1, %v5671_v0 }
  0xe9   :  { %v6373_v6 = vpop.f32.mrb[8].mxu0  ;;  %v6375_v7 = vpop.f32.mrb[8].mxu1  ;;  %5453 = vmatprep.subr.bf16.mxu0 %v5671_v0  ;;  %5459 = vmatprep.subr.bf16.mxu1 %v5671_v0 }
  0xea   :  { %v5121_v10 = vpop.f32.mrb[9].mxu0  ;;  %v5127_v11 = vpop.f32.mrb[9].mxu1 }
  0xeb   :  { %v319_v12 = vpop.f32.mrb[10].mxu0  ;;  %v365_v13 = vpop.f32.mrb[10].mxu1 }
  0xec   :  { %v5122_v16 = vpop.f32.mrb[11].mxu0  ;;  %v5128_v17 = vpop.f32.mrb[11].mxu1  ;;  %v3102_v13 = vld [vmem:[%s7286_s2 + $0x2] sm:$0x1] }
  0xed   :  { %v3352_v17 = vsel %vm94_vm0, %v3136_v5, 0  ;;  %v3109_v5 = vld [vmem:[%s7286_s2 + $0x9] sm:$0x1] }
  0xee   :  { %5444 = vmatmul.mubr.msk.bf16.vlgmr.msra.gmra.mrb[116].mxu0 %vm90_vm2, %v1590_v14  ;;  %5450 = vmatmul.mubr.msk.bf16.vlgmr.msra.gmra.mrb[116].mxu1 %vm90_vm2, %v1591_v15  ;;  %v3103_v14 = vld [vmem:[%s7286_s2 + $0x3] sm:$0x1] }
  0xef   :  { %5454 = vmatpush3.bf16.msra.mxu0 %v2920_v18  ;;  %5460 = vmatpush3.bf16.msra.mxu1 %v2966_v19  ;;  %v3398_v18 = vsel %vm94_vm0, %v3137_v8, 0 }
  0xf0   :  { %5455 = vmatprep.mubr.msk.bf16.mxu0 %vm5672_vm1, %v5671_v0  ;;  %5461 = vmatprep.mubr.msk.bf16.mxu1 %vm5672_vm1, %v5671_v0 }
  0xf1   :  { %v6399_v20 = vpop.f32.mrb[12].mxu0  ;;  %v6401_v21 = vpop.f32.mrb[12].mxu1  ;;  %5465 = vmatprep.subr.bf16.mxu0 %v5671_v0  ;;  %5471 = vmatprep.subr.bf16.mxu1 %v5671_v0 }
  0xf2   :  { %v5133_v24 = vpop.f32.mrb[13].mxu0  ;;  %v5139_v25 = vpop.f32.mrb[13].mxu1 }
  0xf3   :  { %v411_v26 = vpop.f32.mrb[14].mxu0  ;;  %v457_v27 = vpop.f32.mrb[14].mxu1  ;;  %v3139_v24 = vld [vmem:[%s7285_s5 + $0xe] sm:$0x3] }
  0xf4   :  { %v5134_v30 = vpop.f32.mrb[15].mxu0  ;;  %v5140_v31 = vpop.f32.mrb[15].mxu1  ;;  %v3490_v36 = vsel %vm94_vm0, %v3139_v24, 0  ;;  %v3110_v24 = vld [vmem:[%s7286_s2 + $0xa] sm:$0x1] }
  0xf5   :  { %v3105_v30 = vld [vmem:[%s7286_s2 + $0x5] sm:$0x1] }
  0xf6   :  { %5456 = vmatmul.mubr.msk.bf16.vlgmr.msra.gmra.mrb[120].mxu0 %vm90_vm2, %v1592_v28  ;;  %5462 = vmatmul.mubr.msk.bf16.vlgmr.msra.gmra.mrb[120].mxu1 %vm90_vm2, %v1593_v29  ;;  %v3104_v29 = vld [vmem:[%s7286_s2 + $0x4] sm:$0x1] }
  0xf7   :  { %5466 = vmatpush3.bf16.msra.mxu0 %v3012_v32  ;;  %5472 = vmatpush3.bf16.msra.mxu1 %v3058_v33  ;;  %v3444_v33 = vsel %vm94_vm0, %v3138_v23, 0 }
  0xf8   :  { %5467 = vmatprep.mubr.msk.bf16.mxu0 %vm5672_vm1, %v5671_v0  ;;  %5473 = vmatprep.mubr.msk.bf16.mxu1 %vm5672_vm1, %v5671_v0 }
  0xf9   :  { %v6425_v34 = vpop.f32.mrb[16].mxu0  ;;  %v6427_v35 = vpop.f32.mrb[16].mxu1  ;;  %5477 = vmatprep.subr.bf16.mxu0 %v5671_v0  ;;  %5483 = vmatprep.subr.bf16.mxu1 %v5671_v0 }
  0xfa   :  { %v5145_v38 = vpop.f32.mrb[17].mxu0  ;;  %v5151_v39 = vpop.f32.mrb[17].mxu1 }
  0xfb   :  { %v503_v40 = vpop.f32.mrb[18].mxu0  ;;  %v549_v43 = vpop.f32.mrb[18].mxu1  ;;  %v3140_v39 = vld [vmem:[%s7285_s5 + $0x10] sm:$0x3] }
  0xfc   :  { %v5146_v46 = vpop.f32.mrb[19].mxu0  ;;  %v5152_v47 = vpop.f32.mrb[19].mxu1  ;;  %v3141_v40 = vld [vmem:[%s7285_s5 + $0x12] sm:$0x3]  ;;  %v3536_v53 = vsel %vm94_vm0, %v3140_v39, 0 }
  0xfd   :  { %v3106_v47 = vld [vmem:[%s7286_s2 + $0x6] sm:$0x1] }
  0xfe   :  { %5468 = vmatmul.mubr.msk.bf16.vlgmr.msra.gmra.mrb[124].mxu0 %vm90_vm2, %v1594_v44  ;;  %5474 = vmatmul.mubr.msk.bf16.vlgmr.msra.gmra.mrb[124].mxu1 %vm90_vm2, %v1595_v45 }
  0xff   :  { %5478 = vmatpush3.bf16.msra.mxu0 %v3168_v48  ;;  %5484 = vmatpush3.bf16.msra.mxu1 %v3214_v49  ;;  %v3107_v48 = vld [vmem:[%s7286_s2 + $0x7] sm:$0x1] }
 0x100   :  { %5479 = vmatprep.mubr.msk.bf16.mxu0 %vm5672_vm1, %v5671_v0  ;;  %5485 = vmatprep.mubr.msk.bf16.mxu1 %vm5672_vm1, %v5671_v0 }
 0x101   :  { %v6451_v50 = vpop.f32.mrb[20].mxu0  ;;  %v6453_v51 = vpop.f32.mrb[20].mxu1  ;;  %5489 = vmatprep.subr.bf16.mxu0 %v5671_v0  ;;  %5495 = vmatprep.subr.bf16.mxu1 %v5671_v0 }
 0x102   :  { %v5157_v54 = vpop.f32.mrb[21].mxu0  ;;  %v5163_v57 = vpop.f32.mrb[21].mxu1 }
 0x103   :  { %v595_v58 = vpop.f32.mrb[22].mxu0  ;;  %v641_v59 = vpop.f32.mrb[22].mxu1  ;;  %v3582_v54 = vsel %vm94_vm0, %v3141_v40, 0 }
 0x104   :  { %v5158_v62 = vpop.f32.mrb[23].mxu0  ;;  %v5164_v63 = vpop.f32.mrb[23].mxu1  ;;  %v3142_v59 = vld [vmem:[%s7285_s5 + $0x14] sm:$0x3] }
 0x106   :  { %5480 = vmatmul.mubr.msk.bf16.vlgmr.msra.gmra.mrb[128].mxu0 %vm90_vm2, %v3100_v60  ;;  %5486 = vmatmul.mubr.msk.bf16.vlgmr.msra.gmra.mrb[128].mxu1 %vm90_vm2, %v3101_v61  ;;  %v3143_v60 = vld [vmem:[%s7285_s5 + $0x16] sm:$0x3] }
 0x107   :  { %5490 = vmatpush3.bf16.msra.mxu0 %v3260_v1  ;;  %5496 = vmatpush3.bf16.msra.mxu1 %v3306_v2  ;;  %v3108_v2 = vld [vmem:[%s7286_s2 + $0x8] sm:$0x1] }
 0x108   :  { %5491 = vmatprep.mubr.msk.bf16.mxu0 %vm5672_vm1, %v5671_v0  ;;  %5497 = vmatprep.mubr.msk.bf16.mxu1 %vm5672_vm1, %v5671_v0 }
 0x109   :  { %v6477_v3 = vpop.f32.mrb[24].mxu0  ;;  %v6479_v4 = vpop.f32.mrb[24].mxu1  ;;  %5501 = vmatprep.subr.bf16.mxu0 %v5671_v0  ;;  %5507 = vmatprep.subr.bf16.mxu1 %v5671_v0 }
 0x10a   :  { %v5169_v9 = vpop.f32.mrb[25].mxu0  ;;  %v5175_v10 = vpop.f32.mrb[25].mxu1 }
 0x10b   :  { %v687_v11 = vpop.f32.mrb[26].mxu0  ;;  %v733_v12 = vpop.f32.mrb[26].mxu1  ;;  %v3628_v10 = vsel %vm94_vm0, %v3142_v59, 0  ;;  %v3149_v59 = vld [vmem:[%s7285_s5 + $0x22] sm:$0x3] }
 0x10c   :  { %v5170_v15 = vpop.f32.mrb[27].mxu0  ;;  %v5176_v16 = vpop.f32.mrb[27].mxu1  ;;  %v3674_v11 = vsel %vm94_vm0, %v3143_v60, 0 }
 0x10d   :  { %v3145_v15 = vld [vmem:[%s7285_s5 + $0x1a] sm:$0x3] }
 0x10e   :  { %5492 = vmatmul.mubr.msk.bf16.vlgmr.msra.gmra.mrb[132].mxu0 %vm90_vm2, %v3102_v13  ;;  %5498 = vmatmul.mubr.msk.bf16.vlgmr.msra.gmra.mrb[132].mxu1 %vm90_vm2, %v3103_v14  ;;  %v3144_v14 = vld [vmem:[%s7285_s5 + $0x18] sm:$0x3] }
 0x10f   :  { %5502 = vmatpush3.bf16.msra.mxu0 %v3352_v17  ;;  %5508 = vmatpush3.bf16.msra.mxu1 %v3398_v18 }
 0x110   :  { %5503 = vmatprep.mubr.msk.bf16.mxu0 %vm5672_vm1, %v5671_v0  ;;  %5509 = vmatprep.mubr.msk.bf16.mxu1 %vm5672_vm1, %v5671_v0 }
 0x111   :  { %v6503_v19 = vpop.f32.mrb[28].mxu0  ;;  %v6505_v22 = vpop.f32.mrb[28].mxu1  ;;  %5513 = vmatprep.subr.bf16.mxu0 %v5671_v0  ;;  %5519 = vmatprep.subr.bf16.mxu1 %v5671_v0 }
 0x112   :  { %v5181_v25 = vpop.f32.mrb[29].mxu0  ;;  %v5187_v26 = vpop.f32.mrb[29].mxu1 }
 0x113   :  { %v779_v27 = vpop.f32.mrb[30].mxu0  ;;  %v825_v28 = vpop.f32.mrb[30].mxu1  ;;  %v3111_v25 = vld [vmem:[%s7286_s2 + $0xb] sm:$0x1] }
 0x114   :  { %v5182_v31 = vpop.f32.mrb[31].mxu0  ;;  %v5188_v32 = vpop.f32.mrb[31].mxu1  ;;  %v3720_v28 = vsel %vm94_vm0, %v3144_v14, 0 }
 0x115   :  { %v3146_v32 = vld [vmem:[%s7285_s5 + $0x1c] sm:$0x3] }
 0x116   :  { %5504 = vmatmul.mubr.msk.bf16.vlgmr.msra.gmra.mrb[136].mxu0 %vm90_vm2, %v3104_v29  ;;  %5510 = vmatmul.mubr.msk.bf16.vlgmr.msra.gmra.mrb[136].mxu1 %vm90_vm2, %v3105_v30  ;;  %v3766_v29 = vsel %vm94_vm0, %v3145_v15, 0  ;;  %v3150_v15 = vld [vmem:[%s7285_s5 + $0x24] sm:$0x3] }
 0x117   :  { %5514 = vmatpush3.bf16.msra.mxu0 %v3444_v33  ;;  %5520 = vmatpush3.bf16.msra.mxu1 %v3490_v36  ;;  %v3147_v33 = vld [vmem:[%s7285_s5 + $0x1e] sm:$0x3] }
 0x118   :  { %5515 = vmatprep.mubr.msk.bf16.mxu0 %vm5672_vm1, %v5671_v0  ;;  %5521 = vmatprep.mubr.msk.bf16.mxu1 %vm5672_vm1, %v5671_v0 }
 0x119   :  { %v6529_v37 = vpop.f32.mrb[32].mxu0  ;;  %v6531_v38 = vpop.f32.mrb[32].mxu1  ;;  %5525 = vmatprep.subr.bf16.mxu0 %v5671_v0  ;;  %5531 = vmatprep.subr.bf16.mxu1 %v5671_v0 }
 0x11a   :  { %v5193_v43 = vpop.f32.mrb[33].mxu0  ;;  %v5199_v44 = vpop.f32.mrb[33].mxu1 }
 0x11b   :  { %v871_v45 = vpop.f32.mrb[34].mxu0  ;;  %v917_v46 = vpop.f32.mrb[34].mxu1  ;;  %v3112_v44 = vld [vmem:[%s7286_s2 + $0xc] sm:$0x1] }
 0x11c   :  { %v5194_v49 = vpop.f32.mrb[35].mxu0  ;;  %v5200_v52 = vpop.f32.mrb[35].mxu1  ;;  %v3113_v45 = vld [vmem:[%s7286_s2 + $0xd] sm:$0x1] }
 0x11d   :  { %v3858_v49 = vsel %vm94_vm0, %v3147_v33, 0 }
 0x11e   :  { %5516 = vmatmul.mubr.msk.bf16.vlgmr.msra.gmra.mrb[140].mxu0 %vm90_vm2, %v3106_v47  ;;  %5522 = vmatmul.mubr.msk.bf16.vlgmr.msra.gmra.mrb[140].mxu1 %vm90_vm2, %v3107_v48  ;;  %v3812_v48 = vsel %vm94_vm0, %v3146_v32, 0 }
 0x11f   :  { %5526 = vmatpush3.bf16.msra.mxu0 %v3536_v53  ;;  %5532 = vmatpush3.bf16.msra.mxu1 %v3582_v54  ;;  %v3148_v54 = vld [vmem:[%s7285_s5 + $0x20] sm:$0x3] }
 0x120   :  { %5527 = vmatprep.mubr.msk.bf16.mxu0 %vm5672_vm1, %v5671_v0  ;;  %5533 = vmatprep.mubr.msk.bf16.mxu1 %vm5672_vm1, %v5671_v0 }
 0x121   :  { %v6555_v57 = vpop.f32.mrb[36].mxu0  ;;  %v6557_v58 = vpop.f32.mrb[36].mxu1  ;;  %5537 = vmatprep.subr.bf16.mxu0 %v5671_v0  ;;  %5543 = vmatprep.subr.bf16.mxu1 %v5671_v0 }
 0x122   :  { %v5205_v61 = vpop.f32.mrb[37].mxu0  ;;  %v5211_v62 = vpop.f32.mrb[37].mxu1 }
 0x123   :  { %v963_v63 = vpop.f32.mrb[38].mxu0  ;;  %v1009_v1 = vpop.f32.mrb[38].mxu1 }
 0x124   :  { %v5206_v8 = vpop.f32.mrb[39].mxu0  ;;  %v5212_v9 = vpop.f32.mrb[39].mxu1  ;;  %v3114_v1 = vld [vmem:[%s7286_s2 + $0xe] sm:$0x1] }
 0x125   :  { %v3904_v9 = vsel %vm94_vm0, %v3148_v54, 0 }
 0x126   :  { %5528 = vmatmul.mubr.msk.bf16.vlgmr.msra.gmra.mrb[144].mxu0 %vm90_vm2, %v3108_v2  ;;  %5534 = vmatmul.mubr.msk.bf16.vlgmr.msra.gmra.mrb[144].mxu1 %vm90_vm2, %v3109_v5  ;;  %v3115_v2 = vld [vmem:[%s7286_s2 + $0xf] sm:$0x1] }
 0x127   :  { %5538 = vmatpush3.bf16.msra.mxu0 %v3628_v10  ;;  %5544 = vmatpush3.bf16.msra.mxu1 %v3674_v11  ;;  %v3950_v10 = vsel %vm94_vm0, %v3149_v59, 0 }
 0x128   :  { %5539 = vmatprep.mubr.msk.bf16.mxu0 %vm5672_vm1, %v5671_v0  ;;  %5545 = vmatprep.mubr.msk.bf16.mxu1 %vm5672_vm1, %v5671_v0 }
 0x129   :  { %v6581_v12 = vpop.f32.mrb[40].mxu0  ;;  %v6583_v13 = vpop.f32.mrb[40].mxu1  ;;  %5549 = vmatprep.subr.bf16.mxu0 %v5671_v0  ;;  %5555 = vmatprep.subr.bf16.mxu1 %v5671_v0 }
 0x12a   :  { %v5217_v16 = vpop.f32.mrb[41].mxu0  ;;  %v5223_v17 = vpop.f32.mrb[41].mxu1 }
 0x12b   :  { %v1055_v18 = vpop.f32.mrb[42].mxu0  ;;  %v1101_v23 = vpop.f32.mrb[42].mxu1  ;;  %v3151_v16 = vld [vmem:[%s7285_s5 + $0x26] sm:$0x3] }
 0x12c   :  { %v5218_v26 = vpop.f32.mrb[43].mxu0  ;;  %v5224_v27 = vpop.f32.mrb[43].mxu1  ;;  %v4042_v32 = vsel %vm94_vm0, %v3151_v16, 0 }
 0x12d   :  { %v3117_v26 = vld [vmem:[%s7286_s2 + $0x11] sm:$0x1] }
 0x12e   :  { %5540 = vmatmul.mubr.msk.bf16.vlgmr.msra.gmra.mrb[148].mxu0 %vm90_vm2, %v3110_v24  ;;  %5546 = vmatmul.mubr.msk.bf16.vlgmr.msra.gmra.mrb[148].mxu1 %vm90_vm2, %v3111_v25  ;;  %v3116_v25 = vld [vmem:[%s7286_s2 + $0x10] sm:$0x1] }
 0x12f   :  { %5550 = vmatpush3.bf16.msra.mxu0 %v3720_v28  ;;  %5556 = vmatpush3.bf16.msra.mxu1 %v3766_v29  ;;  %v3996_v29 = vsel %vm94_vm0, %v3150_v15, 0  ;;  %v3121_v15 = vld [vmem:[%s7286_s2 + $0x15] sm:$0x1] }
 0x130   :  { %5551 = vmatprep.mubr.msk.bf16.mxu0 %vm5672_vm1, %v5671_v0  ;;  %5557 = vmatprep.mubr.msk.bf16.mxu1 %vm5672_vm1, %v5671_v0 }
 0x131   :  { %v6607_v30 = vpop.f32.mrb[44].mxu0  ;;  %v6609_v31 = vpop.f32.mrb[44].mxu1  ;;  %5561 = vmatprep.subr.bf16.mxu0 %v5671_v0  ;;  %5567 = vmatprep.subr.bf16.mxu1 %v5671_v0 }
 0x132   :  { %v5229_v36 = vpop.f32.mrb[45].mxu0  ;;  %v5235_v39 = vpop.f32.mrb[45].mxu1 }
 0x133   :  { %v1147_v40 = vpop.f32.mrb[46].mxu0  ;;  %v1193_v43 = vpop.f32.mrb[46].mxu1  ;;  %v3152_v39 = vld [vmem:[%s7285_s5 + $0x28] sm:$0x3] }
 0x134   :  { %v5230_v46 = vpop.f32.mrb[47].mxu0  ;;  %v5236_v47 = vpop.f32.mrb[47].mxu1  ;;  %v3153_v40 = vld [vmem:[%s7285_s5 + $0x2a] sm:$0x3]  ;;  %v4088_v59 = vsel %vm94_vm0, %v3152_v39, 0 }
 0x135   :  { %v3118_v47 = vld [vmem:[%s7286_s2 + $0x12] sm:$0x1] }
 0x136   :  { %5552 = vmatmul.mubr.msk.bf16.vlgmr.msra.gmra.mrb[152].mxu0 %vm90_vm2, %v3112_v44  ;;  %5558 = vmatmul.mubr.msk.bf16.vlgmr.msra.gmra.mrb[152].mxu1 %vm90_vm2, %v3113_v45 }
 0x137   :  { %5562 = vmatpush3.bf16.msra.mxu0 %v3812_v48  ;;  %5568 = vmatpush3.bf16.msra.mxu1 %v3858_v49  ;;  %v3119_v48 = vld [vmem:[%s7286_s2 + $0x13] sm:$0x1] }
 0x138   :  { %5563 = vmatprep.mubr.msk.bf16.mxu0 %vm5672_vm1, %v5671_v0  ;;  %5569 = vmatprep.mubr.msk.bf16.mxu1 %vm5672_vm1, %v5671_v0 }
 0x139   :  { %v6633_v52 = vpop.f32.mrb[48].mxu0  ;;  %v6635_v53 = vpop.f32.mrb[48].mxu1  ;;  %5573 = vmatprep.subr.bf16.mxu0 %v5671_v0  ;;  %5579 = vmatprep.subr.bf16.mxu1 %v5671_v0 }
 0x13a   :  { %v5241_v60 = vpop.f32.mrb[49].mxu0  ;;  %v5247_v61 = vpop.f32.mrb[49].mxu1 }
 0x13b   :  { %v1239_v62 = vpop.f32.mrb[50].mxu0  ;;  %v1285_v63 = vpop.f32.mrb[50].mxu1  ;;  %v4134_v60 = vsel %vm94_vm0, %v3153_v40, 0 }
 0x13c   :  { %v5242_v5 = vpop.f32.mrb[51].mxu0  ;;  %v5248_v8 = vpop.f32.mrb[51].mxu1  ;;  %v3154_v63 = vld [vmem:[%s7285_s5 + $0x2c] sm:$0x3] }
 0x13e   :  { %5564 = vmatmul.mubr.msk.bf16.vlgmr.msra.gmra.mrb[156].mxu0 %vm90_vm2, %v3114_v1  ;;  %5570 = vmatmul.mubr.msk.bf16.vlgmr.msra.gmra.mrb[156].mxu1 %vm90_vm2, %v3115_v2  ;;  %v3155_v1 = vld [vmem:[%s7285_s5 + $0x2e] sm:$0x3] }
 0x13f   :  { %5574 = vmatpush3.bf16.msra.mxu0 %v3904_v9  ;;  %5580 = vmatpush3.bf16.msra.mxu1 %v3950_v10  ;;  %v3120_v10 = vld [vmem:[%s7286_s2 + $0x14] sm:$0x1] }
 0x140   :  { %5575 = vmatprep.mubr.msk.bf16.mxu0 %vm5672_vm1, %v5671_v0  ;;  %5581 = vmatprep.mubr.msk.bf16.mxu1 %vm5672_vm1, %v5671_v0 }
 0x141   :  { %v6659_v11 = vpop.f32.mrb[52].mxu0  ;;  %v6661_v14 = vpop.f32.mrb[52].mxu1  ;;  %5585 = vmatprep.subr.bf16.mxu0 %v5671_v0  ;;  %5591 = vmatprep.subr.bf16.mxu1 %v5671_v0 }
 0x142   :  { %v5253_v17 = vpop.f32.mrb[53].mxu0  ;;  %v5259_v18 = vpop.f32.mrb[53].mxu1 }
 0x143   :  { %v1331_v23 = vpop.f32.mrb[54].mxu0  ;;  %v1377_v24 = vpop.f32.mrb[54].mxu1  ;;  %v4180_v18 = vsel %vm94_vm0, %v3154_v63, 0  ;;  %v3159_v63 = vld [vmem:[%s7285_s5 + $0x36] sm:$0x3] }
 0x144   :  { %v5254_v27 = vpop.f32.mrb[55].mxu0  ;;  %v5260_v28 = vpop.f32.mrb[55].mxu1  ;;  %v4226_v23 = vsel %vm94_vm0, %v3155_v1, 0 }
 0x145   :  { %v3157_v27 = vld [vmem:[%s7285_s5 + $0x32] sm:$0x3] }
 0x146   :  { %5576 = vmatmul.mubr.msk.bf16.vlgmr.msra.gmra.mrb[160].mxu0 %vm90_vm2, %v3116_v25  ;;  %5582 = vmatmul.mubr.msk.bf16.vlgmr.msra.gmra.mrb[160].mxu1 %vm90_vm2, %v3117_v26  ;;  %v3156_v26 = vld [vmem:[%s7285_s5 + $0x30] sm:$0x3] }
 0x147   :  { %5586 = vmatpush3.bf16.msra.mxu0 %v3996_v29  ;;  %5592 = vmatpush3.bf16.msra.mxu1 %v4042_v32 }
 0x148   :  { %5587 = vmatprep.mubr.msk.bf16.mxu0 %vm5672_vm1, %v5671_v0  ;;  %5593 = vmatprep.mubr.msk.bf16.mxu1 %vm5672_vm1, %v5671_v0 }
 0x149   :  { %v6685_v33 = vpop.f32.mrb[56].mxu0  ;;  %v6687_v36 = vpop.f32.mrb[56].mxu1  ;;  %5597 = vmatprep.subr.bf16.mxu0 %v5671_v0  ;;  %5603 = vmatprep.subr.bf16.mxu1 %v5671_v0 }
 0x14a   :  { %7304 = vst [vmem:[#allocation2_spill] sm:$0xff] %v6685_v33  ;;  %7305 = vst [vmem:[#allocation3_spill] sm:$0xff] %v6687_v36  ;;  %v5265_v43 = vpop.f32.mrb[57].mxu0  ;;  %v5271_v44 = vpop.f32.mrb[57].mxu1 }
 0x14b   :  { %v1423_v45 = vpop.f32.mrb[58].mxu0  ;;  %v1469_v46 = vpop.f32.mrb[58].mxu1  ;;  %v3122_v44 = vld [vmem:[%s7286_s2 + $0x16] sm:$0x1] }
 0x14c   :  { %v5266_v49 = vpop.f32.mrb[59].mxu0  ;;  %v5272_v54 = vpop.f32.mrb[59].mxu1  ;;  %v3123_v45 = vld [vmem:[%s7286_s2 + $0x17] sm:$0x1] }
 0x14d   :  { %v4318_v49 = vsel %vm94_vm0, %v3157_v27, 0 }
 0x14e   :  { %5588 = vmatmul.mubr.msk.bf16.vlgmr.msra.gmra.mrb[164].mxu0 %vm90_vm2, %v3118_v47  ;;  %5594 = vmatmul.mubr.msk.bf16.vlgmr.msra.gmra.mrb[164].mxu1 %vm90_vm2, %v3119_v48  ;;  %v4272_v48 = vsel %vm94_vm0, %v3156_v26, 0  ;;  %v4410_v26 = vsel %vm94_vm0, %v3159_v63, 0 }
 0x14f   :  { %5598 = vmatpush3.bf16.msra.mxu0 %v4088_v59  ;;  %5604 = vmatpush3.bf16.msra.mxu1 %v4134_v60  ;;  %v3158_v60 = vld [vmem:[%s7285_s5 + $0x34] sm:$0x3] }
 0x150   :  { %5599 = vmatprep.mubr.msk.bf16.mxu0 %vm5672_vm1, %v5671_v0  ;;  %5605 = vmatprep.mubr.msk.bf16.mxu1 %vm5672_vm1, %v5671_v0 }
 0x151   :  { %v6711_v61 = vpop.f32.mrb[60].mxu0  ;;  %v6713_v62 = vpop.f32.mrb[60].mxu1  ;;  %5609 = vmatprep.subr.bf16.mxu0 %v5671_v0  ;;  %5615 = vmatprep.subr.bf16.mxu1 %v5671_v0 }
 0x152   :  { %7306 = vst [vmem:[#allocation4_spill] sm:$0xff] %v6711_v61  ;;  %7307 = vst [vmem:[#allocation5_spill] sm:$0xff] %v6713_v62  ;;  %v5277_v2 = vpop.f32.mrb[61].mxu0  ;;  %v5283_v5 = vpop.f32.mrb[61].mxu1 }
 0x153   :  { %v1515_v8 = vpop.f32.mrb[62].mxu0  ;;  %v1561_v9 = vpop.f32.mrb[62].mxu1 }
 0x154   :  { %v5278_v16 = vpop.f32.mrb[63].mxu0  ;;  %v5284_v17 = vpop.f32.mrb[63].mxu1 }
 0x155   :  { %v3125_v16 = vld [vmem:[%s7286_s2 + $0x19] sm:$0x1] }
 0x156   :  { %5600 = vmatmul.mubr.msk.bf16.vlgmr.msra.gmra.mrb[168].mxu0 %vm90_vm2, %v3120_v10  ;;  %5606 = vmatmul.mubr.msk.bf16.vlgmr.msra.gmra.mrb[168].mxu1 %vm90_vm2, %v3121_v15  ;;  %v3124_v15 = vld [vmem:[%s7286_s2 + $0x18] sm:$0x1] }
 0x157   :  { %5610 = vmatpush3.bf16.msra.mxu0 %v4180_v18  ;;  %5616 = vmatpush3.bf16.msra.mxu1 %v4226_v23  ;;  %v4364_v23 = vsel %vm94_vm0, %v3158_v60, 0 }
 0x158   :  { %5611 = vmatprep.mubr.msk.bf16.mxu0 %vm5672_vm1, %v5671_v0  ;;  %5617 = vmatprep.mubr.msk.bf16.mxu1 %vm5672_vm1, %v5671_v0 }
 0x159   :  { %v6737_v24 = vpop.f32.mrb[64].mxu0  ;;  %v6739_v25 = vpop.f32.mrb[64].mxu1  ;;  %5621 = vmatprep.subr.bf16.mxu0 %v5671_v0  ;;  %5627 = vmatprep.subr.bf16.mxu1 %v5671_v0 }
 0x15a   :  { %v4636_v28 = vsub.f32 %v6321_v41, %v6737_v24  ;;  %v4637_v29 = vsub.f32 %v6323_v42, %v6739_v25  ;;  %v5289_v32 = vpop.f32.mrb[65].mxu0  ;;  %v5295_v39 = vpop.f32.mrb[65].mxu1 }
 0x15b   :  { %v1671_v40 = vpop.f32.mrb[66].mxu0  ;;  %v1717_v43 = vpop.f32.mrb[66].mxu1  ;;  %v3161_v32 = vld [vmem:[%s7285_s5 + $0x3a] sm:$0x3] }
 0x15c   :  { %4669 = vst.msk [vmem:[%s7287_s6] sm:$0x3] %vm4668_vm3, %v4636_v28  ;;  %4670 = vst.msk [vmem:[%s7287_s6 + $0x2] sm:$0x3] %vm4668_vm3, %v4637_v29  ;;  %v5290_v46 = vpop.f32.mrb[67].mxu0  ;;  %v5296_v47 = vpop.f32.mrb[67].mxu1 }
 0x15d   :  { %v3160_v29 = vld [vmem:[%s7285_s5 + $0x38] sm:$0x3]  ;;  %v3126_v47 = vld [vmem:[%s7286_s2 + $0x1a] sm:$0x1] }
 0x15e   :  { %5612 = vmatmul.mubr.msk.bf16.vlgmr.msra.gmra.mrb[172].mxu0 %vm90_vm2, %v3122_v44  ;;  %5618 = vmatmul.mubr.msk.bf16.vlgmr.msra.gmra.mrb[172].mxu1 %vm90_vm2, %v3123_v45  ;;  %v4456_v63 = vsel %vm94_vm0, %v3160_v29, 0  ;;  %v3129_v29 = vld [vmem:[%s7286_s2 + $0x1d] sm:$0x1] }
 0x15f   :  { %5622 = vmatpush3.bf16.msra.mxu0 %v4272_v48  ;;  %5628 = vmatpush3.bf16.msra.mxu1 %v4318_v49  ;;  %v3127_v48 = vld [vmem:[%s7286_s2 + $0x1b] sm:$0x1] }
 0x160   :  { %5623 = vmatprep.mubr.msk.bf16.mxu0 %vm5672_vm1, %v5671_v0  ;;  %5629 = vmatprep.mubr.msk.bf16.mxu1 %vm5672_vm1, %v5671_v0 }
 0x161   :  { %v6775_v54 = vpop.f32.mrb[68].mxu0  ;;  %v6777_v59 = vpop.f32.mrb[68].mxu1  ;;  %5633 = vmatprep.subr.bf16.mxu0 %v5671_v0  ;;  %5639 = vmatprep.subr.bf16.mxu1 %v5671_v0 }
 0x162   :  { %v4638_v1 = vsub.f32 %v6347_v55, %v6775_v54  ;;  %v4639_v2 = vsub.f32 %v6349_v56, %v6777_v59  ;;  %v5301_v5 = vpop.f32.mrb[69].mxu0  ;;  %v5307_v8 = vpop.f32.mrb[69].mxu1 }
 0x163   :  { %v1763_v9 = vpop.f32.mrb[70].mxu0  ;;  %v1809_v10 = vpop.f32.mrb[70].mxu1  ;;  %v3162_v8 = vld [vmem:[%s7285_s5 + $0x3c] sm:$0x3] }
 0x164   :  { %4671 = vst.msk [vmem:[%s7287_s6 + $0x4] sm:$0x3] %vm4668_vm3, %v4638_v1  ;;  %4672 = vst.msk [vmem:[%s7287_s6 + $0x6] sm:$0x3] %vm4668_vm3, %v4639_v2  ;;  %v5302_v17 = vpop.f32.mrb[71].mxu0  ;;  %v5308_v18 = vpop.f32.mrb[71].mxu1 }
 0x165   :  { %v4502_v1 = vsel %vm94_vm0, %v3161_v32, 0  ;;  %v3163_v9 = vld [vmem:[%s7285_s5 + $0x3e] sm:$0x3] }
 0x166   :  { %5624 = vmatmul.mubr.msk.bf16.vlgmr.msra.gmra.mrb[176].mxu0 %vm90_vm2, %v3124_v15  ;;  %5630 = vmatmul.mubr.msk.bf16.vlgmr.msra.gmra.mrb[176].mxu1 %vm90_vm2, %v3125_v16 }
 0x167   :  { %5634 = vmatpush3.bf16.msra.mxu0 %v4364_v23  ;;  %5640 = vmatpush3.bf16.msra.mxu1 %v4410_v26  ;;  %v3128_v26 = vld [vmem:[%s7286_s2 + $0x1c] sm:$0x1] }
 0x168   :  { %5635 = vmatprep.mubr.msk.bf16.mxu0 %vm5672_vm1, %v5671_v0  ;;  %5641 = vmatprep.mubr.msk.bf16.mxu1 %vm5672_vm1, %v5671_v0 }
 0x169   :  { %v6813_v27 = vpop.f32.mrb[72].mxu0  ;;  %v6815_v28 = vpop.f32.mrb[72].mxu1  ;;  %5645 = vmatprep.subr.bf16.mxu0 %v5671_v0  ;;  %5651 = vmatprep.subr.bf16.mxu1 %v5671_v0 }
 0x16a   :  { %v4640_v39 = vsub.f32 %v6373_v6, %v6813_v27  ;;  %v4641_v40 = vsub.f32 %v6375_v7, %v6815_v28  ;;  %v5313_v43 = vpop.f32.mrb[73].mxu0  ;;  %v5319_v44 = vpop.f32.mrb[73].mxu1 }
 0x16b   :  { %v1855_v45 = vpop.f32.mrb[74].mxu0  ;;  %v1901_v46 = vpop.f32.mrb[74].mxu1  ;;  %v4594_v43 = vsel %vm94_vm0, %v3163_v9, 0 }
 0x16c   :  { %4673 = vst.msk [vmem:[%s7287_s6 + $0x8] sm:$0x3] %vm4668_vm3, %v4640_v39  ;;  %4674 = vst.msk [vmem:[%s7287_s6 + $0xa] sm:$0x3] %vm4668_vm3, %v4641_v40  ;;  %v5314_v49 = vpop.f32.mrb[75].mxu0  ;;  %v5320_v60 = vpop.f32.mrb[75].mxu1 }
 0x16d   :  { %v4548_v40 = vsel %vm94_vm0, %v3162_v8, 0 }
 0x16e   :  { %5636 = vmatmul.mubr.msk.bf16.vlgmr.msra.gmra.mrb[180].mxu0 %vm90_vm2, %v3126_v47  ;;  %5642 = vmatmul.mubr.msk.bf16.vlgmr.msra.gmra.mrb[180].mxu1 %vm90_vm2, %v3127_v48 }
 0x16f   :  { %5646 = vmatpush3.bf16.msra.mxu0 %v4456_v63  ;;  %5652 = vmatpush3.bf16.msra.mxu1 %v4502_v1  ;;  %v3130_v1 = vld [vmem:[%s7286_s2 + $0x1e] sm:$0x1] }
 0x170   :  { %5647 = vmatprep.mubr.msk.bf16.mxu0 %vm5672_vm1, %v5671_v0  ;;  %5653 = vmatprep.mubr.msk.bf16.mxu1 %vm5672_vm1, %v5671_v0 }
 0x171   :  { %v6851_v2 = vpop.f32.mrb[76].mxu0  ;;  %v6853_v5 = vpop.f32.mrb[76].mxu1  ;;  %5657 = vmatprep.subr.bf16.mxu0 %v5671_v0  ;;  %5663 = vmatprep.subr.bf16.mxu1 %v5671_v0 }
 0x172   :  { %v4642_v10 = vsub.f32 %v6399_v20, %v6851_v2  ;;  %v4643_v15 = vsub.f32 %v6401_v21, %v6853_v5  ;;  %v5325_v16 = vpop.f32.mrb[77].mxu0  ;;  %v5331_v17 = vpop.f32.mrb[77].mxu1 }
 0x173   :  { %v1947_v18 = vpop.f32.mrb[78].mxu0  ;;  %v1993_v23 = vpop.f32.mrb[78].mxu1 }
 0x174   :  { %4675 = vst.msk [vmem:[%s7287_s6 + $0xc] sm:$0x3] %vm4668_vm3, %v4642_v10  ;;  %4676 = vst.msk [vmem:[%s7287_s6 + $0xe] sm:$0x3] %vm4668_vm3, %v4643_v15  ;;  %v5326_v32 = vpop.f32.mrb[79].mxu0  ;;  %v5332_v39 = vpop.f32.mrb[79].mxu1 }
 0x176   :  { %5648 = vmatmul.mubr.msk.bf16.vlgmr.msra.gmra.mrb[184].mxu0 %vm90_vm2, %v3128_v26  ;;  %5654 = vmatmul.mubr.msk.bf16.vlgmr.msra.gmra.mrb[184].mxu1 %vm90_vm2, %v3129_v29 }
 0x177   :  { %5658 = vmatpush3.bf16.msra.mxu0 %v4548_v40  ;;  %5664 = vmatpush3.bf16.msra.mxu1 %v4594_v43 }
 0x178   :  { %5659 = vmatprep.mubr.msk.bf16.mxu0 %vm5672_vm1, %v5671_v0  ;;  %5665 = vmatprep.mubr.msk.bf16.mxu1 %vm5672_vm1, %v5671_v0  ;;  %v3131_v0 = vld [vmem:[%s7286_s2 + $0x1f] sm:$0x1] }
 0x179   :  { %v6889_v44 = vpop.f32.mrb[80].mxu0  ;;  %v6891_v45 = vpop.f32.mrb[80].mxu1 }
 0x17a   :  { %v4644_v46 = vsub.f32 %v6425_v34, %v6889_v44  ;;  %v4645_v47 = vsub.f32 %v6427_v35, %v6891_v45  ;;  %v5337_v48 = vpop.f32.mrb[81].mxu0  ;;  %v5343_v49 = vpop.f32.mrb[81].mxu1 }
 0x17b   :  { %v2039_v60 = vpop.f32.mrb[82].mxu0  ;;  %v2085_v63 = vpop.f32.mrb[82].mxu1 }
 0x17c   :  { %4677 = vst.msk [vmem:[%s7287_s6 + $0x10] sm:$0x3] %vm4668_vm3, %v4644_v46  ;;  %4678 = vst.msk [vmem:[%s7287_s6 + $0x12] sm:$0x3] %vm4668_vm3, %v4645_v47  ;;  %v5338_v8 = vpop.f32.mrb[83].mxu0  ;;  %v5344_v9 = vpop.f32.mrb[83].mxu1 }
 0x17e   :  { %5660 = vmatmul.mubr.msk.bf16.vlgmr.msra.gmra.mrb[188].mxu0 %vm90_vm2, %v3130_v1  ;;  %5666 = vmatmul.mubr.msk.bf16.vlgmr.msra.gmra.mrb[188].mxu1 %vm90_vm2, %v3131_v0 }
 0x181   :  { %v6913_v10 = vpop.f32.mrb[84].mxu0  ;;  %v6915_v15 = vpop.f32.mrb[84].mxu1 }
 0x182   :  { %v4646_v16 = vsub.f32 %v6451_v50, %v6913_v10  ;;  %v4647_v17 = vsub.f32 %v6453_v51, %v6915_v15  ;;  %v5349_v18 = vpop.f32.mrb[85].mxu0  ;;  %v5355_v23 = vpop.f32.mrb[85].mxu1 }
 0x183   :  { %v2131_v26 = vpop.f32.mrb[86].mxu0  ;;  %v2177_v29 = vpop.f32.mrb[86].mxu1 }
 0x184   :  { %4679 = vst.msk [vmem:[%s7287_s6 + $0x14] sm:$0x3] %vm4668_vm3, %v4646_v16  ;;  %4680 = vst.msk [vmem:[%s7287_s6 + $0x16] sm:$0x3] %vm4668_vm3, %v4647_v17  ;;  %v5350_v32 = vpop.f32.mrb[87].mxu0  ;;  %v5356_v39 = vpop.f32.mrb[87].mxu1 }
 0x189   :  { %v6929_v40 = vpop.f32.mrb[88].mxu0  ;;  %v6931_v43 = vpop.f32.mrb[88].mxu1 }
 0x18a   :  { %v4648_v46 = vsub.f32 %v6477_v3, %v6929_v40  ;;  %v4649_v47 = vsub.f32 %v6479_v4, %v6931_v43  ;;  %v5361_v48 = vpop.f32.mrb[89].mxu0  ;;  %v5367_v49 = vpop.f32.mrb[89].mxu1 }
 0x18b   :  { %v2223_v60 = vpop.f32.mrb[90].mxu0  ;;  %v2269_v63 = vpop.f32.mrb[90].mxu1 }
 0x18c   :  { %4681 = vst.msk [vmem:[%s7287_s6 + $0x18] sm:$0x3] %vm4668_vm3, %v4648_v46  ;;  %4682 = vst.msk [vmem:[%s7287_s6 + $0x1a] sm:$0x3] %vm4668_vm3, %v4649_v47  ;;  %v5362_v1 = vpop.f32.mrb[91].mxu0  ;;  %v5368_v0 = vpop.f32.mrb[91].mxu1 }
 0x191   :  { %v6945_v8 = vpop.f32.mrb[92].mxu0  ;;  %v6947_v9 = vpop.f32.mrb[92].mxu1 }
 0x192   :  { %v4650_v16 = vsub.f32 %v6503_v19, %v6945_v8  ;;  %v4651_v17 = vsub.f32 %v6505_v22, %v6947_v9  ;;  %v5373_v18 = vpop.f32.mrb[93].mxu0  ;;  %v5379_v23 = vpop.f32.mrb[93].mxu1 }
 0x193   :  { %v2315_v26 = vpop.f32.mrb[94].mxu0  ;;  %v2361_v29 = vpop.f32.mrb[94].mxu1 }
 0x194   :  { %4683 = vst.msk [vmem:[%s7287_s6 + $0x1c] sm:$0x3] %vm4668_vm3, %v4650_v16  ;;  %4684 = vst.msk [vmem:[%s7287_s6 + $0x1e] sm:$0x3] %vm4668_vm3, %v4651_v17  ;;  %v5374_v32 = vpop.f32.mrb[95].mxu0  ;;  %v5380_v39 = vpop.f32.mrb[95].mxu1 }
 0x199   :  { %v6961_v46 = vpop.f32.mrb[96].mxu0  ;;  %v6963_v47 = vpop.f32.mrb[96].mxu1 }
 0x19a   :  { %v4652_v48 = vsub.f32 %v6529_v37, %v6961_v46  ;;  %v4653_v49 = vsub.f32 %v6531_v38, %v6963_v47  ;;  %v5385_v60 = vpop.f32.mrb[97].mxu0  ;;  %v5391_v63 = vpop.f32.mrb[97].mxu1 }
 0x19b   :  { %v2407_v1 = vpop.f32.mrb[98].mxu0  ;;  %v2453_v0 = vpop.f32.mrb[98].mxu1 }
 0x19c   :  { %4685 = vst.msk [vmem:[%s7287_s6 + $0x20] sm:$0x3] %vm4668_vm3, %v4652_v48  ;;  %4686 = vst.msk [vmem:[%s7287_s6 + $0x22] sm:$0x3] %vm4668_vm3, %v4653_v49  ;;  %v5386_v16 = vpop.f32.mrb[99].mxu0  ;;  %v5392_v17 = vpop.f32.mrb[99].mxu1 }
 0x1a1   :  { %v6977_v18 = vpop.f32.mrb[100].mxu0  ;;  %v6979_v23 = vpop.f32.mrb[100].mxu1 }
 0x1a2   :  { %v4654_v26 = vsub.f32 %v6555_v57, %v6977_v18  ;;  %v4655_v29 = vsub.f32 %v6557_v58, %v6979_v23  ;;  %v5397_v32 = vpop.f32.mrb[101].mxu0  ;;  %v5403_v39 = vpop.f32.mrb[101].mxu1 }
 0x1a3   :  { %v2499_v48 = vpop.f32.mrb[102].mxu0  ;;  %v2545_v60 = vpop.f32.mrb[102].mxu1 }
 0x1a4   :  { %4687 = vst.msk [vmem:[%s7287_s6 + $0x24] sm:$0x3] %vm4668_vm3, %v4654_v26  ;;  %4688 = vst.msk [vmem:[%s7287_s6 + $0x26] sm:$0x3] %vm4668_vm3, %v4655_v29  ;;  %v5398_v49 = vpop.f32.mrb[103].mxu0  ;;  %v5404_v63 = vpop.f32.mrb[103].mxu1 }
 0x1a9   :  { %v6993_v1 = vpop.f32.mrb[104].mxu0  ;;  %v6995_v0 = vpop.f32.mrb[104].mxu1 }
 0x1aa   :  { %7308 = vst [vmem:[#allocation6_spill] sm:$0xff] %v6995_v0  ;;  %v4656_v16 = vsub.f32 %v6581_v12, %v6993_v1  ;;  %v4657_v17 = vsub.f32 %v6583_v13, %v6995_v0  ;;  %v5409_v32 = vpop.f32.mrb[105].mxu0  ;;  %v5415_v39 = vpop.f32.mrb[105].mxu1 }
 0x1ab   :  { %v2591_v26 = vpop.f32.mrb[106].mxu0  ;;  %v2637_v48 = vpop.f32.mrb[106].mxu1 }
 0x1ac   :  { %4689 = vst.msk [vmem:[%s7287_s6 + $0x28] sm:$0x3] %vm4668_vm3, %v4656_v16  ;;  %4690 = vst.msk [vmem:[%s7287_s6 + $0x2a] sm:$0x3] %vm4668_vm3, %v4657_v17  ;;  %v5410_v29 = vpop.f32.mrb[107].mxu0  ;;  %v5416_v60 = vpop.f32.mrb[107].mxu1 }
 0x1b1   :  { %v7009_v49 = vpop.f32.mrb[108].mxu0  ;;  %v7011_v63 = vpop.f32.mrb[108].mxu1 }
 0x1b2   :  { %7309 = vst [vmem:[#allocation7_spill] sm:$0xff] %v7009_v49  ;;  %7310 = vst [vmem:[#allocation8_spill] sm:$0xff] %v7011_v63  ;;  %v4658_v32 = vsub.f32 %v6607_v30, %v7009_v49  ;;  %v4659_v39 = vsub.f32 %v6609_v31, %v7011_v63  ;;  %v5421_v26 = vpop.f32.mrb[109].mxu0  ;;  %v5427_v48 = vpop.f32.mrb[109].mxu1 }
 0x1b3   :  { %v2683_v16 = vpop.f32.mrb[110].mxu0  ;;  %v2729_v0 = vpop.f32.mrb[110].mxu1 }
 0x1b4   :  { %4691 = vst.msk [vmem:[%s7287_s6 + $0x2c] sm:$0x3] %vm4668_vm3, %v4658_v32  ;;  %4692 = vst.msk [vmem:[%s7287_s6 + $0x2e] sm:$0x3] %vm4668_vm3, %v4659_v39  ;;  %v5422_v17 = vpop.f32.mrb[111].mxu0  ;;  %v5428_v29 = vpop.f32.mrb[111].mxu1 }
 0x1b9   :  { %v7025_v60 = vpop.f32.mrb[112].mxu0  ;;  %v7027_v49 = vpop.f32.mrb[112].mxu1 }
 0x1ba   :  { %7311 = vst [vmem:[#allocation9_spill] sm:$0xff] %v7025_v60  ;;  %7312 = vst [vmem:[#allocation10_spill] sm:$0xff] %v7027_v49  ;;  %v4660_v26 = vsub.f32 %v6633_v52, %v7025_v60  ;;  %v4661_v0 = vsub.f32 %v6635_v53, %v7027_v49  ;;  %v5433_v48 = vpop.f32.mrb[113].mxu0  ;;  %v5439_v16 = vpop.f32.mrb[113].mxu1 }
 0x1bb   :  { %v2775_v32 = vpop.f32.mrb[114].mxu0  ;;  %v2821_v63 = vpop.f32.mrb[114].mxu1 }
 0x1bc   :  { %4693 = vst.msk [vmem:[%s7287_s6 + $0x30] sm:$0x3] %vm4668_vm3, %v4660_v26  ;;  %4694 = vst.msk [vmem:[%s7287_s6 + $0x32] sm:$0x3] %vm4668_vm3, %v4661_v0  ;;  %v5434_v39 = vpop.f32.mrb[115].mxu0  ;;  %v5440_v17 = vpop.f32.mrb[115].mxu1 }
 0x1c1   :  { %v7041_v29 = vpop.f32.mrb[116].mxu0  ;;  %v7043_v60 = vpop.f32.mrb[116].mxu1 }
 0x1c2   :  { %7313 = vst [vmem:[#allocation11_spill] sm:$0xff] %v7041_v29  ;;  %7314 = vst [vmem:[#allocation12_spill] sm:$0xff] %v7043_v60  ;;  %v4662_v48 = vsub.f32 %v6659_v11, %v7041_v29  ;;  %v4663_v63 = vsub.f32 %v6661_v14, %v7043_v60  ;;  %v5445_v16 = vpop.f32.mrb[117].mxu0  ;;  %v5451_v32 = vpop.f32.mrb[117].mxu1 }
 0x1c3   :  { %v2867_v26 = vpop.f32.mrb[118].mxu0  ;;  %v2913_v49 = vpop.f32.mrb[118].mxu1 }
 0x1c4   :  { %4695 = vst.msk [vmem:[%s7287_s6 + $0x34] sm:$0x3] %vm4668_vm3, %v4662_v48  ;;  %4696 = vst.msk [vmem:[%s7287_s6 + $0x36] sm:$0x3] %vm4668_vm3, %v4663_v63  ;;  %v5446_v0 = vpop.f32.mrb[119].mxu0  ;;  %v5452_v39 = vpop.f32.mrb[119].mxu1 }
 0x1c9   :  { %v7057_v17 = vpop.f32.mrb[120].mxu0  ;;  %v7059_v29 = vpop.f32.mrb[120].mxu1 }
 0x1ca   :  { %7315 = vst [vmem:[#allocation13_spill] sm:$0xff] %v7057_v17  ;;  %7316 = vst [vmem:[#allocation14_spill] sm:$0xff] %v7059_v29  ;;  %v4664_v16 = vsub.f32 %v6685_v33, %v7057_v17  ;;  %v4665_v49 = vsub.f32 %v6687_v36, %v7059_v29  ;;  %v5457_v32 = vpop.f32.mrb[121].mxu0  ;;  %v5463_v26 = vpop.f32.mrb[121].mxu1 }
 0x1cb   :  { %v2959_v48 = vpop.f32.mrb[122].mxu0  ;;  %v3005_v60 = vpop.f32.mrb[122].mxu1 }
 0x1cc   :  { %4697 = vst.msk [vmem:[%s7287_s6 + $0x38] sm:$0x3] %vm4668_vm3, %v4664_v16  ;;  %4698 = vst.msk [vmem:[%s7287_s6 + $0x3a] sm:$0x3] %vm4668_vm3, %v4665_v49  ;;  %v5458_v63 = vpop.f32.mrb[123].mxu0  ;;  %v5464_v0 = vpop.f32.mrb[123].mxu1 }
 0x1d1   :  { %v7073_v39 = vpop.f32.mrb[124].mxu0  ;;  %v7075_v17 = vpop.f32.mrb[124].mxu1 }
 0x1d2   :  { %7317 = vst [vmem:[#allocation15_spill] sm:$0xff] %v7073_v39  ;;  %7318 = vst [vmem:[#allocation16_spill] sm:$0xff] %v7075_v17  ;;  %v4666_v32 = vsub.f32 %v6711_v61, %v7073_v39  ;;  %v4667_v60 = vsub.f32 %v6713_v62, %v7075_v17  ;;  %v5469_v26 = vpop.f32.mrb[125].mxu0  ;;  %v5475_v48 = vpop.f32.mrb[125].mxu1 }
 0x1d3   :  { %v3051_v16 = vpop.f32.mrb[126].mxu0  ;;  %v3097_v29 = vpop.f32.mrb[126].mxu1 }
 0x1d4   :  { %4699 = vst.msk [vmem:[%s7287_s6 + $0x3c] sm:$0x3] %vm4668_vm3, %v4666_v32  ;;  %4700 = vst.msk [vmem:[%s7287_s6 + $0x3e] sm:$0x3] %vm4668_vm3, %v4667_v60  ;;  %v5470_v49 = vpop.f32.mrb[127].mxu0  ;;  %v5476_v63 = vpop.f32.mrb[127].mxu1 }
 0x1d9   :  { %v3204_v0 = vpop.f32.mrb[128].mxu0  ;;  %v3250_v39 = vpop.f32.mrb[128].mxu1 }
 0x1da   :  { %v4701_v17 = vsub.f32 %v3204_v0, %v6321_v41  ;;  %v4702_v26 = vsub.f32 %v3250_v39, %v6323_v42  ;;  %v5481_v48 = vpop.f32.mrb[129].mxu0  ;;  %v5487_v29 = vpop.f32.mrb[129].mxu1 }
 0x1db   :  { %v3207_v16 = vpop.f32.mrb[130].mxu0  ;;  %v3253_v62 = vpop.f32.mrb[130].mxu1 }
 0x1dc   :  { %v4733_v61 = vsub.f32 %v4701_v17, %v6737_v24  ;;  %v4734_v32 = vsub.f32 %v4702_v26, %v6739_v25  ;;  %v5482_v36 = vpop.f32.mrb[131].mxu0  ;;  %v5488_v33 = vpop.f32.mrb[131].mxu1 }
 0x1de   :  { %4765 = vst.msk [vmem:[%s7288_s7] sm:$0x3] %vm4668_vm3, %v4733_v61  ;;  %4766 = vst.msk [vmem:[%s7288_s7 + $0x2] sm:$0x3] %vm4668_vm3, %v4734_v32 }
 0x1e1   :  { %v3296_v41 = vpop.f32.mrb[132].mxu0  ;;  %v3342_v42 = vpop.f32.mrb[132].mxu1 }
 0x1e2   :  { %v4703_v62 = vsub.f32 %v3296_v41, %v6347_v55  ;;  %v4704_v24 = vsub.f32 %v3342_v42, %v6349_v56  ;;  %v5493_v17 = vpop.f32.mrb[133].mxu0  ;;  %v5499_v25 = vpop.f32.mrb[133].mxu1 }
 0x1e3   :  { %v3299_v36 = vpop.f32.mrb[134].mxu0  ;;  %v3345_v33 = vpop.f32.mrb[134].mxu1 }
 0x1e4   :  { %v4735_v39 = vsub.f32 %v4703_v62, %v6775_v54  ;;  %v4736_v60 = vsub.f32 %v4704_v24, %v6777_v59  ;;  %v5494_v61 = vpop.f32.mrb[135].mxu0  ;;  %v5500_v49 = vpop.f32.mrb[135].mxu1 }
 0x1e6   :  { %4767 = vst.msk [vmem:[%s7288_s7 + $0x4] sm:$0x3] %vm4668_vm3, %v4735_v39  ;;  %4768 = vst.msk [vmem:[%s7288_s7 + $0x6] sm:$0x3] %vm4668_vm3, %v4736_v60 }
 0x1e9   :  { %v3388_v55 = vpop.f32.mrb[136].mxu0  ;;  %v3434_v56 = vpop.f32.mrb[136].mxu1 }
 0x1ea   :  { %v4705_v63 = vsub.f32 %v3388_v55, %v6373_v6  ;;  %v4706_v54 = vsub.f32 %v3434_v56, %v6375_v7  ;;  %v5505_v0 = vpop.f32.mrb[137].mxu0  ;;  %v5511_v59 = vpop.f32.mrb[137].mxu1 }
 0x1eb   :  { %v3391_v26 = vpop.f32.mrb[138].mxu0  ;;  %v3437_v48 = vpop.f32.mrb[138].mxu1 }
 0x1ec   :  { %v4737_v29 = vsub.f32 %v4705_v63, %v6813_v27  ;;  %v4738_v16 = vsub.f32 %v4706_v54, %v6815_v28  ;;  %v5506_v32 = vpop.f32.mrb[139].mxu0  ;;  %v5512_v41 = vpop.f32.mrb[139].mxu1 }
 0x1ee   :  { %4769 = vst.msk [vmem:[%s7288_s7 + $0x8] sm:$0x3] %vm4668_vm3, %v4737_v29  ;;  %4770 = vst.msk [vmem:[%s7288_s7 + $0xa] sm:$0x3] %vm4668_vm3, %v4738_v16 }
 0x1f1   :  { %v3480_v6 = vpop.f32.mrb[140].mxu0  ;;  %v3526_v7 = vpop.f32.mrb[140].mxu1 }
 0x1f2   :  { %v4707_v42 = vsub.f32 %v3480_v6, %v6399_v20  ;;  %v4708_v27 = vsub.f32 %v3526_v7, %v6401_v21  ;;  %v5517_v62 = vpop.f32.mrb[141].mxu0  ;;  %v5523_v28 = vpop.f32.mrb[141].mxu1 }
 0x1f3   :  { %v3483_v24 = vpop.f32.mrb[142].mxu0  ;;  %v3529_v17 = vpop.f32.mrb[142].mxu1 }
 0x1f4   :  { %v4739_v25 = vsub.f32 %v4707_v42, %v6851_v2  ;;  %v4740_v36 = vsub.f32 %v4708_v27, %v6853_v5  ;;  %v5518_v33 = vpop.f32.mrb[143].mxu0  ;;  %v5524_v39 = vpop.f32.mrb[143].mxu1 }
 0x1f6   :  { %4771 = vst.msk [vmem:[%s7288_s7 + $0xc] sm:$0x3] %vm4668_vm3, %v4739_v25  ;;  %4772 = vst.msk [vmem:[%s7288_s7 + $0xe] sm:$0x3] %vm4668_vm3, %v4740_v36 }
 0x1f9   :  { %v3572_v20 = vpop.f32.mrb[144].mxu0  ;;  %v3618_v21 = vpop.f32.mrb[144].mxu1 }
 0x1fa   :  { %v4709_v60 = vsub.f32 %v3572_v20, %v6425_v34  ;;  %v4710_v2 = vsub.f32 %v3618_v21, %v6427_v35  ;;  %v5529_v61 = vpop.f32.mrb[145].mxu0  ;;  %v5535_v5 = vpop.f32.mrb[145].mxu1 }
 0x1fb   :  { %v3575_v49 = vpop.f32.mrb[146].mxu0  ;;  %v3621_v55 = vpop.f32.mrb[146].mxu1 }
 0x1fc   :  { %v4741_v56 = vsub.f32 %v4709_v60, %v6889_v44  ;;  %v4742_v63 = vsub.f32 %v4710_v2, %v6891_v45  ;;  %v5530_v54 = vpop.f32.mrb[147].mxu0  ;;  %v5536_v0 = vpop.f32.mrb[147].mxu1 }
 0x1fe   :  { %4773 = vst.msk [vmem:[%s7288_s7 + $0x10] sm:$0x3] %vm4668_vm3, %v4741_v56  ;;  %4774 = vst.msk [vmem:[%s7288_s7 + $0x12] sm:$0x3] %vm4668_vm3, %v4742_v63 }
 0x201   :  { %v3664_v34 = vpop.f32.mrb[148].mxu0  ;;  %v3710_v35 = vpop.f32.mrb[148].mxu1 }
 0x202   :  { %v4711_v59 = vsub.f32 %v3664_v34, %v6451_v50  ;;  %v4712_v44 = vsub.f32 %v3710_v35, %v6453_v51  ;;  %v5541_v26 = vpop.f32.mrb[149].mxu0  ;;  %v5547_v45 = vpop.f32.mrb[149].mxu1 }
 0x203   :  { %v3667_v48 = vpop.f32.mrb[150].mxu0  ;;  %v3713_v29 = vpop.f32.mrb[150].mxu1 }
 0x204   :  { %v4743_v16 = vsub.f32 %v4711_v59, %v6913_v10  ;;  %v4744_v32 = vsub.f32 %v4712_v44, %v6915_v15  ;;  %v5542_v41 = vpop.f32.mrb[151].mxu0  ;;  %v5548_v6 = vpop.f32.mrb[151].mxu1 }
 0x206   :  { %4775 = vst.msk [vmem:[%s7288_s7 + $0x14] sm:$0x3] %vm4668_vm3, %v4743_v16  ;;  %4776 = vst.msk [vmem:[%s7288_s7 + $0x16] sm:$0x3] %vm4668_vm3, %v4744_v32 }
 0x209   :  { %v3756_v50 = vpop.f32.mrb[152].mxu0  ;;  %v3802_v51 = vpop.f32.mrb[152].mxu1 }
 0x20a   :  { %v4713_v7 = vsub.f32 %v3756_v50, %v6477_v3  ;;  %v4714_v10 = vsub.f32 %v3802_v51, %v6479_v4  ;;  %v5553_v42 = vpop.f32.mrb[153].mxu0  ;;  %v5559_v15 = vpop.f32.mrb[153].mxu1 }
 0x20b   :  { %v3759_v27 = vpop.f32.mrb[154].mxu0  ;;  %v3805_v62 = vpop.f32.mrb[154].mxu1 }
 0x20c   :  { %v4745_v28 = vsub.f32 %v4713_v7, %v6929_v40  ;;  %v4746_v24 = vsub.f32 %v4714_v10, %v6931_v43  ;;  %v5554_v17 = vpop.f32.mrb[155].mxu0  ;;  %v5560_v25 = vpop.f32.mrb[155].mxu1  ;;  %v7319_v7 = vld [vmem:[#allocation6_spill] sm:$0xff] }
 0x20d   :  { %v7320_v25 = vld [vmem:[#allocation7_spill] sm:$0xff] }
 0x20e   :  { %4777 = vst.msk [vmem:[%s7288_s7 + $0x18] sm:$0x3] %vm4668_vm3, %v4745_v28  ;;  %4778 = vst.msk [vmem:[%s7288_s7 + $0x1a] sm:$0x3] %vm4668_vm3, %v4746_v24 }
 0x211   :  { %v3848_v3 = vpop.f32.mrb[156].mxu0  ;;  %v3894_v4 = vpop.f32.mrb[156].mxu1 }
 0x212   :  { %v4715_v36 = vsub.f32 %v3848_v3, %v6503_v19  ;;  %v4716_v40 = vsub.f32 %v3894_v4, %v6505_v22  ;;  %v5565_v33 = vpop.f32.mrb[157].mxu0  ;;  %v5571_v43 = vpop.f32.mrb[157].mxu1  ;;  %v7321_v4 = vld [vmem:[#allocation8_spill] sm:$0xff] }
 0x213   :  { %v3851_v39 = vpop.f32.mrb[158].mxu0  ;;  %v3897_v20 = vpop.f32.mrb[158].mxu1 }
 0x214   :  { %v4747_v21 = vsub.f32 %v4715_v36, %v6945_v8  ;;  %v4748_v60 = vsub.f32 %v4716_v40, %v6947_v9  ;;  %v5566_v2 = vpop.f32.mrb[159].mxu0  ;;  %v5572_v61 = vpop.f32.mrb[159].mxu1 }
 0x215   :  { %v7322_v61 = vld [vmem:[#allocation9_spill] sm:$0xff] }
 0x216   :  { %4779 = vst.msk [vmem:[%s7288_s7 + $0x1c] sm:$0x3] %vm4668_vm3, %v4747_v21  ;;  %4780 = vst.msk [vmem:[%s7288_s7 + $0x1e] sm:$0x3] %vm4668_vm3, %v4748_v60 }
 0x219   :  { %v3940_v19 = vpop.f32.mrb[160].mxu0  ;;  %v3986_v22 = vpop.f32.mrb[160].mxu1 }
 0x21a   :  { %v4717_v5 = vsub.f32 %v3940_v19, %v6529_v37  ;;  %v4718_v8 = vsub.f32 %v3986_v22, %v6531_v38  ;;  %v5577_v49 = vpop.f32.mrb[161].mxu0  ;;  %v5583_v9 = vpop.f32.mrb[161].mxu1  ;;  %v7323_v22 = vld [vmem:[#allocation10_spill] sm:$0xff] }
 0x21b   :  { %v3943_v55 = vpop.f32.mrb[162].mxu0  ;;  %v3989_v56 = vpop.f32.mrb[162].mxu1 }
 0x21c   :  { %v4749_v63 = vsub.f32 %v4717_v5, %v6961_v46  ;;  %v4750_v54 = vsub.f32 %v4718_v8, %v6963_v47  ;;  %v5578_v0 = vpop.f32.mrb[163].mxu0  ;;  %v5584_v34 = vpop.f32.mrb[163].mxu1 }
 0x21d   :  { %v7324_v34 = vld [vmem:[#allocation11_spill] sm:$0xff] }
 0x21e   :  { %4781 = vst.msk [vmem:[%s7288_s7 + $0x20] sm:$0x3] %vm4668_vm3, %v4749_v63  ;;  %4782 = vst.msk [vmem:[%s7288_s7 + $0x22] sm:$0x3] %vm4668_vm3, %v4750_v54 }
 0x221   :  { %v4032_v37 = vpop.f32.mrb[164].mxu0  ;;  %v4078_v38 = vpop.f32.mrb[164].mxu1 }
 0x222   :  { %v4719_v35 = vsub.f32 %v4032_v37, %v6555_v57  ;;  %v4720_v46 = vsub.f32 %v4078_v38, %v6557_v58  ;;  %v5589_v59 = vpop.f32.mrb[165].mxu0  ;;  %v5595_v47 = vpop.f32.mrb[165].mxu1  ;;  %v7325_v38 = vld [vmem:[#allocation12_spill] sm:$0xff] }
 0x223   :  { %v4035_v44 = vpop.f32.mrb[166].mxu0  ;;  %v4081_v26 = vpop.f32.mrb[166].mxu1  ;;  %v7326_v47 = vld [vmem:[#allocation2_spill] sm:$0xff] }
 0x224   :  { %v4751_v45 = vsub.f32 %v4719_v35, %v6977_v18  ;;  %v4752_v48 = vsub.f32 %v4720_v46, %v6979_v23  ;;  %v5590_v29 = vpop.f32.mrb[167].mxu0  ;;  %v5596_v16 = vpop.f32.mrb[167].mxu1  ;;  %v7327_v26 = vld [vmem:[#allocation3_spill] sm:$0xff] }
 0x226   :  { %4783 = vst.msk [vmem:[%s7288_s7 + $0x24] sm:$0x3] %vm4668_vm3, %v4751_v45  ;;  %4784 = vst.msk [vmem:[%s7288_s7 + $0x26] sm:$0x3] %vm4668_vm3, %v4752_v48 }
 0x229   :  { %v4124_v57 = vpop.f32.mrb[168].mxu0  ;;  %v4170_v58 = vpop.f32.mrb[168].mxu1 }
 0x22a   :  { %v4721_v32 = vsub.f32 %v4124_v57, %v6581_v12  ;;  %v4722_v18 = vsub.f32 %v4170_v58, %v6583_v13  ;;  %v5601_v41 = vpop.f32.mrb[169].mxu0  ;;  %v5607_v23 = vpop.f32.mrb[169].mxu1  ;;  %v7328_v58 = vld [vmem:[#allocation13_spill] sm:$0xff] }
 0x22b   :  { %v4127_v6 = vpop.f32.mrb[170].mxu0  ;;  %v4173_v50 = vpop.f32.mrb[170].mxu1 }
 0x22c   :  { %v4753_v51 = vsub.f32 %v4721_v32, %v6993_v1  ;;  %v4754_v10 = vsub.f32 %v4722_v18, %v7319_v7  ;;  %v5602_v42 = vpop.f32.mrb[171].mxu0  ;;  %v5608_v15 = vpop.f32.mrb[171].mxu1  ;;  %v7329_v18 = vld [vmem:[#allocation14_spill] sm:$0xff]  ;;  %v7330_v7 = vld [vmem:[#allocation4_spill] sm:$0xff] }
 0x22d   :  { %v7331_v42 = vld [vmem:[#allocation5_spill] sm:$0xff] }
 0x22e   :  { %4785 = vst.msk [vmem:[%s7288_s7 + $0x28] sm:$0x3] %vm4668_vm3, %v4753_v51  ;;  %4786 = vst.msk [vmem:[%s7288_s7 + $0x2a] sm:$0x3] %vm4668_vm3, %v4754_v10 }
 0x231   :  { %v4216_v12 = vpop.f32.mrb[172].mxu0  ;;  %v4262_v13 = vpop.f32.mrb[172].mxu1 }
 0x232   :  { %v4723_v27 = vsub.f32 %v4216_v12, %v6607_v30  ;;  %v4724_v1 = vsub.f32 %v4262_v13, %v6609_v31  ;;  %v5613_v62 = vpop.f32.mrb[173].mxu0  ;;  %v5619_v28 = vpop.f32.mrb[173].mxu1 }
 0x233   :  { %v4219_v24 = vpop.f32.mrb[174].mxu0  ;;  %v4265_v17 = vpop.f32.mrb[174].mxu1  ;;  %v7332_v62 = vld [vmem:[#allocation15_spill] sm:$0xff] }
 0x234   :  { %v4755_v3 = vsub.f32 %v4723_v27, %v7320_v25  ;;  %v4756_v36 = vsub.f32 %v4724_v1, %v7321_v4  ;;  %v5614_v40 = vpop.f32.mrb[175].mxu0  ;;  %v5620_v33 = vpop.f32.mrb[175].mxu1  ;;  %v7333_v24 = vld [vmem:[#allocation16_spill] sm:$0xff] }
 0x236   :  { %4787 = vst.msk [vmem:[%s7288_s7 + $0x2c] sm:$0x3] %vm4668_vm3, %v4755_v3  ;;  %4788 = vst.msk [vmem:[%s7288_s7 + $0x2e] sm:$0x3] %vm4668_vm3, %v4756_v36 }
 0x239   :  { %v4308_v30 = vpop.f32.mrb[176].mxu0  ;;  %v4354_v31 = vpop.f32.mrb[176].mxu1 }
 0x23a   :  { %v4725_v43 = vsub.f32 %v4308_v30, %v6633_v52  ;;  %v4726_v39 = vsub.f32 %v4354_v31, %v6635_v53  ;;  %v5625_v20 = vpop.f32.mrb[177].mxu0  ;;  %v5631_v21 = vpop.f32.mrb[177].mxu1 }
 0x23b   :  { %v4311_v60 = vpop.f32.mrb[178].mxu0  ;;  %v4357_v2 = vpop.f32.mrb[178].mxu1 }
 0x23c   :  { %v4757_v19 = vsub.f32 %v4725_v43, %v7322_v61  ;;  %v4758_v5 = vsub.f32 %v4726_v39, %v7323_v22  ;;  %v5626_v8 = vpop.f32.mrb[179].mxu0  ;;  %v5632_v49 = vpop.f32.mrb[179].mxu1 }
 0x23e   :  { %4789 = vst.msk [vmem:[%s7288_s7 + $0x30] sm:$0x3] %vm4668_vm3, %v4757_v19  ;;  %4790 = vst.msk [vmem:[%s7288_s7 + $0x32] sm:$0x3] %vm4668_vm3, %v4758_v5 }
 0x241   :  { %v4400_v52 = vpop.f32.mrb[180].mxu0  ;;  %v4446_v53 = vpop.f32.mrb[180].mxu1 }
 0x242   :  { %v4727_v9 = vsub.f32 %v4400_v52, %v6659_v11  ;;  %v4728_v55 = vsub.f32 %v4446_v53, %v6661_v14  ;;  %v5637_v56 = vpop.f32.mrb[181].mxu0  ;;  %v5643_v63 = vpop.f32.mrb[181].mxu1 }
 0x243   :  { %v4403_v54 = vpop.f32.mrb[182].mxu0  ;;  %v4449_v0 = vpop.f32.mrb[182].mxu1 }
 0x244   :  { %v4759_v37 = vsub.f32 %v4727_v9, %v7324_v34  ;;  %v4760_v35 = vsub.f32 %v4728_v55, %v7325_v38  ;;  %v5638_v46 = vpop.f32.mrb[183].mxu0  ;;  %v5644_v59 = vpop.f32.mrb[183].mxu1 }
 0x246   :  { %4791 = vst.msk [vmem:[%s7288_s7 + $0x34] sm:$0x3] %vm4668_vm3, %v4759_v37  ;;  %4792 = vst.msk [vmem:[%s7288_s7 + $0x36] sm:$0x3] %vm4668_vm3, %v4760_v35 }
 0x249   :  { %v4492_v11 = vpop.f32.mrb[184].mxu0  ;;  %v4538_v14 = vpop.f32.mrb[184].mxu1 }
 0x24a   :  { %v4729_v44 = vsub.f32 %v4492_v11, %v7326_v47  ;;  %v4730_v45 = vsub.f32 %v4538_v14, %v7327_v26  ;;  %v5649_v48 = vpop.f32.mrb[185].mxu0  ;;  %v5655_v29 = vpop.f32.mrb[185].mxu1 }
 0x24b   :  { %v4495_v16 = vpop.f32.mrb[186].mxu0  ;;  %v4541_v57 = vpop.f32.mrb[186].mxu1 }
 0x24c   :  { %v4761_v32 = vsub.f32 %v4729_v44, %v7328_v58  ;;  %v4762_v41 = vsub.f32 %v4730_v45, %v7329_v18  ;;  %v5650_v23 = vpop.f32.mrb[187].mxu0  ;;  %v5656_v6 = vpop.f32.mrb[187].mxu1 }
 0x24e   :  { %4793 = vst.msk [vmem:[%s7288_s7 + $0x38] sm:$0x3] %vm4668_vm3, %v4761_v32  ;;  %4794 = vst.msk [vmem:[%s7288_s7 + $0x3a] sm:$0x3] %vm4668_vm3, %v4762_v41 }
 0x251   :  { %v4584_v50 = vpop.f32.mrb[188].mxu0  ;;  %v4630_v51 = vpop.f32.mrb[188].mxu1 }
 0x252   :  { %v4731_v10 = vsub.f32 %v4584_v50, %v7330_v7  ;;  %v4732_v15 = vsub.f32 %v4630_v51, %v7331_v42  ;;  %v5661_v12 = vpop.f32.mrb[189].mxu0  ;;  %v5667_v13 = vpop.f32.mrb[189].mxu1 }
 0x253   :  { %v4587_v27 = vpop.f32.mrb[190].mxu0  ;;  %v4633_v1 = vpop.f32.mrb[190].mxu1 }
 0x254   :  { %v4763_v28 = vsub.f32 %v4731_v10, %v7332_v62  ;;  %v4764_v17 = vsub.f32 %v4732_v15, %v7333_v24  ;;  %v5662_v25 = vpop.f32.mrb[191].mxu0  ;;  %v5668_v3 = vpop.f32.mrb[191].mxu1 }
 0x256   :  { %4795 = vst.msk [vmem:[%s7288_s7 + $0x3c] sm:$0x3] %vm4668_vm3, %v4763_v28  ;;  %4796 = vst.msk [vmem:[%s7288_s7 + $0x3e] sm:$0x3] %vm4668_vm3, %v4764_v17 }

</bundles_post_ra>
